<compile_context>
chip_gen: v7x
topology: tpu7x:2x2x1
jax: 0.10.0
libtpu: 0.0.40
codegen_flags: <defaults>
</compile_context>

<pallas_src>
import functools
import math

import jax
import jax.numpy as jnp
from jax.experimental import pallas as pl
from jax.experimental.pallas import tpu as pltpu


MATMUL_DTYPE = jnp.float32   # set to jnp.bfloat16 for faster/looser matmuls


# ----------------------------------------------------------------------------
# In-kernel math helpers (only traced inside Pallas kernels)
# ----------------------------------------------------------------------------
def _mm(a, b):
    """a @ b with float32 accumulation (operands optionally cast to bf16)."""
    return jnp.dot(a.astype(MATMUL_DTYPE), b.astype(MATMUL_DTYPE),
                   preferred_element_type=jnp.float32)


def _mm_nt(a, b):
    """a @ b.T with float32 accumulation."""
    return jax.lax.dot_general(
        a.astype(MATMUL_DTYPE), b.astype(MATMUL_DTYPE),
        (((1,), (1,)), ((), ())), preferred_element_type=jnp.float32)


def _erf_f32(x):
    # Abramowitz & Stegun 7.1.26 rational approximation, |err| <= 1.5e-7,
    # i.e. erf at float32 working precision.  Avoids relying on a lax.erf
    # lowering inside Mosaic.
    a1, a2, a3 = 0.254829592, -0.284496736, 1.421413741
    a4, a5, p = -1.453152027, 1.061405429, 0.3275911
    ax = jnp.abs(x)
    t = 1.0 / (1.0 + p * ax)
    poly = ((((a5 * t + a4) * t + a3) * t + a2) * t + a1) * t
    y = 1.0 - poly * jnp.exp(-ax * ax)
    return jnp.where(x < 0.0, -y, y)


def _gelu_exact(x):
    # nn.GELU() default (approximate='none'):  x * Phi(x).
    return 0.5 * x * (1.0 + _erf_f32(x * 0.7071067811865476))


def _threshold_math(x, gamma, beta, thr, alpha):
    """ImprovedEmergentThresholdLayer.forward, eval mode (f32 VPU math).

    x:(R,F)  gamma/beta/thr:(1,F)  alpha: scalar.
    """
    mean = jnp.mean(x, axis=-1, keepdims=True)
    diff = x - mean
    var = jnp.mean(diff * diff, axis=-1, keepdims=True)      # biased, eps=1e-5
    x_norm = diff * jax.lax.rsqrt(var + 1e-5) * gamma + beta
    gate = jax.nn.sigmoid(jnp.abs(x_norm) - thr)              # temperature 1.0
    out = alpha * (gate * x) + (1.0 - alpha) * x
    return jnp.clip(out, -100.0, 100.0)


# ----------------------------------------------------------------------------
# Pallas kernels
# ----------------------------------------------------------------------------
def _attn_block_kernel(sc_ref, x_ref, wqkv_ref, bqkv_ref, wo_ref, bo_ref,
                       g1_ref, be1_ref, t1_ref, o_ref, *, n_heads):
    """Fused: QKV -> thresholded causal attention -> out proj -> th1 -> +res.

    sc_ref:(1, 2+H) packed scalars [attn_scale, alpha_th1, thr_head0..H-1]
    x_ref:(1,T,E)  wqkv:(E,3E)  bqkv:(1,3E)  wo:(E,E)  bo:(1,E)
    g1/be1/t1:(1,E) threshold1 gamma/beta/threshold       o:(1,T,E)
    """
    x = x_ref[0]                                    # (T, E)
    t_len, e = x.shape
    hd = e // n_heads

    qkv = _mm(x, wqkv_ref[...]) + bqkv_ref[...]     # (T, 3E) = [q | k | v]
    wo = wo_ref[...]                                # (E, E)
    scale = sc_ref[0, 0]

    row = jax.lax.broadcasted_iota(jnp.int32, (t_len, t_len), 0)
    col = jax.lax.broadcasted_iota(jnp.int32, (t_len, t_len), 1)
    causal = col > row                              # upper triangle -> -inf

    # TODO(synk): for large T replace the dense (T,T) score tile with
    # flash-style K tiling + online softmax; fine at toy sequence lengths.
    attn_out = jnp.zeros((t_len, e), jnp.float32)
    for h in range(n_heads):                        # static unroll over heads
        q_h = qkv[:, h * hd:(h + 1) * hd]
        k_h = qkv[:, e + h * hd:e + (h + 1) * hd]
        v_h = qkv[:, 2 * e + h * hd:2 * e + (h + 1) * hd]

        s = _mm_nt(q_h, k_h) * scale                # (T, T)
        s = jnp.where(causal, -jnp.inf, s)
        # mask = ~isinf(scores) & (scores < per-head threshold) -> -10000.0
        below = jnp.logical_and(jnp.logical_not(causal), s < sc_ref[0, 2 + h])
        s = jnp.where(below, -10000.0, s)

        m = jnp.max(s, axis=-1, keepdims=True)
        p = jnp.exp(s - m)
        attn = p / jnp.sum(p, axis=-1, keepdims=True)

        ctx_h = _mm(attn, v_h)                      # (T, hd)
        # sum_h ctx_h @ Wo[h*hd:(h+1)*hd, :] == concat_h(ctx_h) @ Wo
        attn_out = attn_out + _mm(ctx_h, wo[h * hd:(h + 1) * hd, :])
    attn_out = attn_out + bo_ref[...]

    y = _threshold_math(attn_out, g1_ref[...], be1_ref[...], t1_ref[...],
                        sc_ref[0, 1])
    o_ref[0] = x + y                                # residual fused in-kernel


def _ffn_block_kernel(sc_ref, x_ref, w1_ref, b1_ref, gff_ref, bff_ref, tff_ref,
                      w2_ref, b2_ref, g2_ref, be2_ref, t2_ref, o_ref):
    """Fused: Linear(E,4E) -> threshold(4E) -> exact GELU -> Linear(4E,E)
    -> threshold2 -> +residual.    sc_ref:(1,2) = [alpha_ff_th, alpha_th2].
    """
    x = x_ref[0]                                            # (T, E)
    hidden = _mm(x, w1_ref[...]) + b1_ref[...]              # (T, 4E)
    hidden = _threshold_math(hidden, gff_ref[...], bff_ref[...], tff_ref[...],
                             sc_ref[0, 0])
    hidden = _gelu_exact(hidden)                            # GELU in-kernel
    ff = _mm(hidden, w2_ref[...]) + b2_ref[...]             # (T, E)
    y = _threshold_math(ff, g2_ref[...], be2_ref[...], t2_ref[...],
                        sc_ref[0, 1])
    o_ref[0] = x + y


def _final_head_kernel(sc_ref, x_ref, gf_ref, bf_ref, tf_ref, w_ref, b_ref,
                       o_ref):
    """Fused: final threshold -> Linear(E, vocab).   sc_ref:(1,1) = [alpha]."""
    x = x_ref[0]
    y = _threshold_math(x, gf_ref[...], bf_ref[...], tf_ref[...], sc_ref[0, 0])
    o_ref[0] = _mm(y, w_ref[...]) + b_ref[...]


# ----------------------------------------------------------------------------
# pallas_call wrappers
# ----------------------------------------------------------------------------
def _full(arr):
    """Whole-array block, revisited every grid step (no re-fetch)."""
    shape = arr.shape
    return pl.BlockSpec(shape, lambda *_: (0,) * len(shape))


def _batch_spec(t, f):
    return pl.BlockSpec((1, t, f), lambda b: (b, 0, 0))


def attention_block(x, bp, n_heads):
    b, t, e = x.shape
    th1 = bp["th1"]
    return pl.pallas_call(
        functools.partial(_attn_block_kernel, n_heads=n_heads),
        out_shape=jax.ShapeDtypeStruct((b, t, e), jnp.float32),
        grid=(b,),
        in_specs=[
            _full(bp["attn_scalars"]),
            _batch_spec(t, e),
            _full(bp["wqkv"]), _full(bp["bqkv"]),
            _full(bp["wo"]), _full(bp["bo"]),
            _full(th1["gamma"]), _full(th1["beta"]), _full(th1["thr"]),
        ],
        out_specs=_batch_spec(t, e),
        compiler_params=pltpu.CompilerParams(
            dimension_semantics=("parallel",)),      # >=2 steps for v7x cores
    )(bp["attn_scalars"], x, bp["wqkv"], bp["bqkv"], bp["wo"], bp["bo"],
      th1["gamma"], th1["beta"], th1["thr"])


def ffn_block(x, bp):
    b, t, e = x.shape
    th_ff, th2 = bp["th_ff"], bp["th2"]
    return pl.pallas_call(
        _ffn_block_kernel,
        out_shape=jax.ShapeDtypeStruct((b, t, e), jnp.float32),
        grid=(b,),
        in_specs=[
            _full(bp["ffn_scalars"]),
            _batch_spec(t, e),
            _full(bp["ff_w1"]), _full(bp["ff_b1"]),
            _full(th_ff["gamma"]), _full(th_ff["beta"]), _full(th_ff["thr"]),
            _full(bp["ff_w2"]), _full(bp["ff_b2"]),
            _full(th2["gamma"]), _full(th2["beta"]), _full(th2["thr"]),
        ],
        out_specs=_batch_spec(t, e),
        compiler_params=pltpu.CompilerParams(dimension_semantics=("parallel",)),
    )(bp["ffn_scalars"], x, bp["ff_w1"], bp["ff_b1"],
      th_ff["gamma"], th_ff["beta"], th_ff["thr"],
      bp["ff_w2"], bp["ff_b2"],
      th2["gamma"], th2["beta"], th2["thr"])


def final_head(x, params):
    b, t, e = x.shape
    v = params["lnf_w"].shape[1]
    thf = params["final_th"]
    return pl.pallas_call(
        _final_head_kernel,
        out_shape=jax.ShapeDtypeStruct((b, t, v), jnp.float32),
        grid=(b,),
        in_specs=[
            _full(params["final_scalars"]),
            _batch_spec(t, e),
            _full(thf["gamma"]), _full(thf["beta"]), _full(thf["thr"]),
            _full(params["lnf_w"]), _full(params["lnf_b"]),
        ],
        out_specs=_batch_spec(t, v),
        compiler_params=pltpu.CompilerParams(dimension_semantics=("parallel",)),
    )(params["final_scalars"], x, thf["gamma"], thf["beta"], thf["thr"],
      params["lnf_w"], params["lnf_b"])


# ----------------------------------------------------------------------------
# Model forward (embedding gathers are plain-JAX glue)
# ----------------------------------------------------------------------------
def byte_transformer_forward(tokens, params, n_heads):
    _, t = tokens.shape
    x = params["token_embedding"][tokens] + params["pos_embedding"][:t][None, :, :]
    for bp in params["blocks"]:
        x = attention_block(x, bp, n_heads)
        x = ffn_block(x, bp)
    return final_head(x, params)


# ----------------------------------------------------------------------------
# Deterministic parameter construction (eval-mode constants pre-derived)
# ----------------------------------------------------------------------------
def _prep_threshold(dim):
    """Eval-mode ImprovedEmergentThresholdLayer constants.

    gamma/beta = LayerNorm weight/bias          (init: ones / zeros)
    alpha      = sigmoid(adaptive_threshold)    (init: sigmoid(0.5))
    thr        = alpha * sqrt(clamp(running_var, 1e-6))   (init running_var=1)
    When loading a trained checkpoint, recompute thr/alpha from the real
    adaptive_threshold parameter and running_var buffer.
    """
    adaptive_threshold = jnp.asarray(0.5, jnp.float32)
    running_var = jnp.ones((dim,), jnp.float32)
    alpha = jax.nn.sigmoid(adaptive_threshold)
    thr = alpha * jnp.sqrt(jnp.maximum(running_var, 1e-6))
    vecs = dict(gamma=jnp.ones((1, dim), jnp.float32),
                beta=jnp.zeros((1, dim), jnp.float32),
                thr=thr.reshape(1, dim))
    return vecs, alpha


def init_params(key, vocab_size, embed_dim, n_heads, n_layers, block_size):
    keys = iter(jax.random.split(key, 6 * n_layers + 3))

    def dense(din, dout):
        w = 0.02 * jax.random.normal(next(keys), (din, dout), jnp.float32)
        b = jnp.zeros((1, dout), jnp.float32)
        return w, b

    head_dim = embed_dim // n_heads
    params = dict(
        token_embedding=0.02 * jax.random.normal(
            next(keys), (vocab_size, embed_dim), jnp.float32),
        pos_embedding=0.02 * jax.random.normal(
            next(keys), (block_size, embed_dim), jnp.float32),
        blocks=[],
    )
    params["lnf_w"], params["lnf_b"] = dense(embed_dim, vocab_size)
    final_vecs, final_alpha = _prep_threshold(embed_dim)
    params["final_th"] = final_vecs
    params["final_scalars"] = final_alpha.reshape(1, 1)

    for _ in range(n_layers):
        wq, bq = dense(embed_dim, embed_dim)
        wk, bk = dense(embed_dim, embed_dim)
        wv, bv = dense(embed_dim, embed_dim)
        wo, bo = dense(embed_dim, embed_dim)
        w1, b1 = dense(embed_dim, 4 * embed_dim)
        w2, b2 = dense(4 * embed_dim, embed_dim)

        th1, alpha1 = _prep_threshold(embed_dim)
        th2, alpha2 = _prep_threshold(embed_dim)
        th_ff, alpha_ff = _prep_threshold(4 * embed_dim)

        # ThresholdedAttention eval-mode constants.
        attn_scale = jnp.asarray(1.0 / math.sqrt(head_dim), jnp.float32)
        score_running_var = jnp.ones((n_heads,), jnp.float32)   # buffer init
        thr_heads = jax.nn.sigmoid(jnp.asarray(0.5, jnp.float32)) * jnp.sqrt(
            jnp.maximum(score_running_var, 1e-6))               # (H,)

        attn_scalars = jnp.concatenate(
            [attn_scale.reshape(1), alpha1.reshape(1), thr_heads]).reshape(1, -1)
        ffn_scalars = jnp.stack([alpha_ff, alpha2]).reshape(1, 2)

        params["blocks"].append(dict(
            # Fused QKV: y = x @ wqkv + bqkv, columns ordered [q | k | v].
            wqkv=jnp.concatenate([wq, wk, wv], axis=1),          # (E, 3E)
            bqkv=jnp.concatenate([bq, bk, bv], axis=1),          # (1, 3E)
            wo=wo, bo=bo,
            attn_scalars=attn_scalars,                           # (1, 2+H)
            th1=th1,
            ff_w1=w1, ff_b1=b1, ff_w2=w2, ff_b2=b2,
            th_ff=th_ff, th2=th2,
            ffn_scalars=ffn_scalars,                             # (1, 2)
        ))
    return params


# ----------------------------------------------------------------------------
# Main
# ----------------------------------------------------------------------------
if __name__ == "__main__":
    VOCAB, EMBED, HEADS, LAYERS, BLOCK = 64, 32, 4, 2, 16
    B, T = 2, 8

    key = jax.random.PRNGKey(0)
    pkey, tkey = jax.random.split(key)
    params = init_params(pkey, VOCAB, EMBED, HEADS, LAYERS, BLOCK)
    tokens = jax.random.randint(tkey, (B, T), 0, VOCAB, dtype=jnp.int32)

    fwd = jax.jit(functools.partial(byte_transformer_forward, n_heads=HEADS))
    logits = fwd(tokens, params)
    jax.block_until_ready(logits)

    assert logits.shape == (B, T, VOCAB), logits.shape
    assert logits.dtype == jnp.float32
    assert bool(jnp.all(jnp.isfinite(logits)))
    print("KERNEL_OK")
</pallas_src>

<mosaic_0001>
module attributes {stable_mosaic.version = 11 : i64} {
  func.func @_final_head_kernel(%arg0: i32, %arg1: memref<1x1xf32, #tpu.memory_space<vmem>>, %arg2: memref<1x8x32xf32, #tpu.memory_space<vmem>>, %arg3: memref<1x32xf32, #tpu.memory_space<vmem>>, %arg4: memref<1x32xf32, #tpu.memory_space<vmem>>, %arg5: memref<1x32xf32, #tpu.memory_space<vmem>>, %arg6: memref<32x64xf32, #tpu.memory_space<vmem>>, %arg7: memref<1x64xf32, #tpu.memory_space<vmem>>, %arg8: memref<1x8x64xf32, #tpu.memory_space<vmem>>) attributes {dimension_semantics = [#tpu.dimension_semantics<parallel>], iteration_bounds = array<i64: 2>, scalar_prefetch = 0 : i64, scratch_operands = 0 : i64, tpu.core_type = #tpu.core_type<tc>, window_params = [{pipeline_mode = #tpu.pipeline_mode<synchronous>, transform_indices = @transform_0, window_bounds = array<i64: 1, 1>}, {transform_indices = @transform_1, window_bounds = array<i64: 1, 8, 32>}, {pipeline_mode = #tpu.pipeline_mode<synchronous>, transform_indices = @transform_2, window_bounds = array<i64: 1, 32>}, {pipeline_mode = #tpu.pipeline_mode<synchronous>, transform_indices = @transform_3, window_bounds = array<i64: 1, 32>}, {pipeline_mode = #tpu.pipeline_mode<synchronous>, transform_indices = @transform_4, window_bounds = array<i64: 1, 32>}, {pipeline_mode = #tpu.pipeline_mode<synchronous>, transform_indices = @transform_5, window_bounds = array<i64: 32, 64>}, {pipeline_mode = #tpu.pipeline_mode<synchronous>, transform_indices = @transform_6, window_bounds = array<i64: 1, 64>}, {transform_indices = @transform_7, window_bounds = array<i64: 1, 8, 64>}]} {
    %c0 = arith.constant 0 : index
    %c0_0 = arith.constant 0 : index
    %c0_1 = arith.constant 0 : index
    %0 = vector.load %arg2[%c0, %c0_0, %c0_1] : memref<1x8x32xf32, #tpu.memory_space<vmem>>, vector<1x8x32xf32>
    %1 = vector.shape_cast %0 : vector<1x8x32xf32> to vector<8x32xf32>
    %c0_2 = arith.constant 0 : index
    %c0_3 = arith.constant 0 : index
    %2 = vector.load %arg3[%c0_2, %c0_3] : memref<1x32xf32, #tpu.memory_space<vmem>>, vector<1x32xf32>
    %c0_4 = arith.constant 0 : index
    %c0_5 = arith.constant 0 : index
    %3 = vector.load %arg4[%c0_4, %c0_5] : memref<1x32xf32, #tpu.memory_space<vmem>>, vector<1x32xf32>
    %c0_6 = arith.constant 0 : index
    %c0_7 = arith.constant 0 : index
    %4 = vector.load %arg5[%c0_6, %c0_7] : memref<1x32xf32, #tpu.memory_space<vmem>>, vector<1x32xf32>
    %c0_8 = arith.constant 0 : index
    %c0_9 = arith.constant 0 : index
    %5 = vector.load %arg1[%c0_8, %c0_9] : memref<1x1xf32, #tpu.memory_space<vmem>>, vector<1x1xf32>
    %6 = vector.extract %5[0, 0] : f32 from vector<1x1xf32>
    %cst = arith.constant dense<0.000000e+00> : vector<8xf32>
    %7 = vector.multi_reduction <add>, %1, %cst [1] : vector<8x32xf32> to vector<8xf32>
    %8 = vector.shape_cast %7 : vector<8xf32> to vector<8x1xf32>
    %cst_10 = arith.constant 3.200000e+01 : f32
    %9 = vector.broadcast %cst_10 : f32 to vector<8x1xf32>
    %10 = arith.divf %8, %9 : vector<8x1xf32>
    %11 = vector.broadcast %10 : vector<8x1xf32> to vector<8x32xf32>
    %12 = arith.subf %1, %11 : vector<8x32xf32>
    %13 = arith.mulf %12, %12 : vector<8x32xf32>
    %cst_11 = arith.constant dense<0.000000e+00> : vector<8xf32>
    %14 = vector.multi_reduction <add>, %13, %cst_11 [1] : vector<8x32xf32> to vector<8xf32>
    %15 = vector.shape_cast %14 : vector<8xf32> to vector<8x1xf32>
    %cst_12 = arith.constant 3.200000e+01 : f32
    %16 = vector.broadcast %cst_12 : f32 to vector<8x1xf32>
    %17 = arith.divf %15, %16 : vector<8x1xf32>
    %cst_13 = arith.constant 9.99999974E-6 : f32
    %18 = vector.broadcast %cst_13 : f32 to vector<8x1xf32>
    %19 = arith.addf %17, %18 : vector<8x1xf32>
    %20 = math.rsqrt %19 : vector<8x1xf32>
    %21 = vector.broadcast %20 : vector<8x1xf32> to vector<8x32xf32>
    %22 = arith.mulf %12, %21 : vector<8x32xf32>
    %23 = vector.broadcast %2 : vector<1x32xf32> to vector<8x32xf32>
    %24 = arith.mulf %22, %23 : vector<8x32xf32>
    %25 = vector.broadcast %3 : vector<1x32xf32> to vector<8x32xf32>
    %26 = arith.addf %24, %25 : vector<8x32xf32>
    %27 = math.absf %26 : vector<8x32xf32>
    %28 = vector.broadcast %4 : vector<1x32xf32> to vector<8x32xf32>
    %29 = arith.subf %27, %28 : vector<8x32xf32>
    %30 = arith.negf %29 : vector<8x32xf32>
    %31 = math.exp %30 : vector<8x32xf32>
    %cst_14 = arith.constant 1.000000e+00 : f32
    %32 = vector.broadcast %cst_14 : f32 to vector<8x32xf32>
    %33 = arith.addf %32, %31 : vector<8x32xf32>
    %34 = arith.divf %32, %33 : vector<8x32xf32>
    %35 = arith.mulf %34, %1 : vector<8x32xf32>
    %36 = vector.broadcast %6 : f32 to vector<8x32xf32>
    %37 = arith.mulf %36, %35 : vector<8x32xf32>
    %cst_15 = arith.constant 1.000000e+00 : f32
    %38 = arith.subf %cst_15, %6 : f32
    %39 = vector.broadcast %38 : f32 to vector<8x32xf32>
    %40 = arith.mulf %39, %1 : vector<8x32xf32>
    %41 = arith.addf %37, %40 : vector<8x32xf32>
    %cst_16 = arith.constant -1.000000e+02 : f32
    %cst_17 = arith.constant 1.000000e+02 : f32
    %42 = vector.broadcast %cst_16 : f32 to vector<8x32xf32>
    %43 = arith.maximumf %42, %41 : vector<8x32xf32>
    %44 = vector.broadcast %cst_17 : f32 to vector<8x32xf32>
    %45 = arith.minimumf %44, %43 : vector<8x32xf32>
    %c0_18 = arith.constant 0 : index
    %c0_19 = arith.constant 0 : index
    %46 = vector.load %arg6[%c0_18, %c0_19] : memref<32x64xf32, #tpu.memory_space<vmem>>, vector<32x64xf32>
    %cst_20 = arith.constant dense<0.000000e+00> : vector<8x64xf32>
    %47 = tpu.matmul %45, %46, %cst_20 {dimension_numbers = #tpu.dot_dimension_numbers<[1], [0], [0], [1], [0, 0, 1, 1], [], []>} : vector<8x32xf32>, vector<32x64xf32>, vector<8x64xf32> -> vector<8x64xf32>
    %c0_21 = arith.constant 0 : index
    %c0_22 = arith.constant 0 : index
    %48 = vector.load %arg7[%c0_21, %c0_22] : memref<1x64xf32, #tpu.memory_space<vmem>>, vector<1x64xf32>
    %49 = vector.broadcast %48 : vector<1x64xf32> to vector<8x64xf32>
    %50 = arith.addf %47, %49 : vector<8x64xf32>
    %c0_23 = arith.constant 0 : index
    %c0_24 = arith.constant 0 : index
    %c0_25 = arith.constant 0 : index
    %51 = vector.load %arg8[%c0_23, %c0_24, %c0_25] : memref<1x8x64xf32, #tpu.memory_space<vmem>>, vector<1x8x64xf32>
    %52 = vector.shape_cast %51 : vector<1x8x64xf32> to vector<8x64xf32>
    %53 = vector.shape_cast %50 : vector<8x64xf32> to vector<1x8x64xf32>
    tpu.vector_store %arg8[%c0_23, %c0_24, %c0_25], %53 {strides = array<i32>} : memref<1x8x64xf32, #tpu.memory_space<vmem>>, vector<1x8x64xf32>,
    return
  }
  func.func @transform_0(%arg0: i32) -> (i32, i32) {
    %c0_i32 = arith.constant 0 : i32
    %c0_i32_0 = arith.constant 0 : i32
    %c0_i32_1 = arith.constant 0 : i32
    return %c0_i32, %c0_i32_0 : i32, i32
  }
  func.func @transform_1(%arg0: i32) -> (i32, i32, i32) {
    %c0_i32 = arith.constant 0 : i32
    %c0_i32_0 = arith.constant 0 : i32
    %c0_i32_1 = arith.constant 0 : i32
    return %arg0, %c0_i32, %c0_i32_0 : i32, i32, i32
  }
  func.func @transform_2(%arg0: i32) -> (i32, i32) {
    %c0_i32 = arith.constant 0 : i32
    %c0_i32_0 = arith.constant 0 : i32
    %c0_i32_1 = arith.constant 0 : i32
    return %c0_i32, %c0_i32_0 : i32, i32
  }
  func.func @transform_3(%arg0: i32) -> (i32, i32) {
    %c0_i32 = arith.constant 0 : i32
    %c0_i32_0 = arith.constant 0 : i32
    %c0_i32_1 = arith.constant 0 : i32
    return %c0_i32, %c0_i32_0 : i32, i32
  }
  func.func @transform_4(%arg0: i32) -> (i32, i32) {
    %c0_i32 = arith.constant 0 : i32
    %c0_i32_0 = arith.constant 0 : i32
    %c0_i32_1 = arith.constant 0 : i32
    return %c0_i32, %c0_i32_0 : i32, i32
  }
  func.func @transform_5(%arg0: i32) -> (i32, i32) {
    %c0_i32 = arith.constant 0 : i32
    %c0_i32_0 = arith.constant 0 : i32
    %c0_i32_1 = arith.constant 0 : i32
    return %c0_i32, %c0_i32_0 : i32, i32
  }
  func.func @transform_6(%arg0: i32) -> (i32, i32) {
    %c0_i32 = arith.constant 0 : i32
    %c0_i32_0 = arith.constant 0 : i32
    %c0_i32_1 = arith.constant 0 : i32
    return %c0_i32, %c0_i32_0 : i32, i32
  }
  func.func @transform_7(%arg0: i32) -> (i32, i32, i32) {
    %c0_i32 = arith.constant 0 : i32
    %c0_i32_0 = arith.constant 0 : i32
    %c0_i32_1 = arith.constant 0 : i32
    return %arg0, %c0_i32, %c0_i32_0 : i32, i32, i32
  }
}

module attributes {stable_mosaic.version = 11 : i64} {
  func.func @_ffn_block_kernel(%arg0: i32, %arg1: memref<1x2xf32, #tpu.memory_space<vmem>>, %arg2: memref<1x8x32xf32, #tpu.memory_space<vmem>>, %arg3: memref<32x128xf32, #tpu.memory_space<vmem>>, %arg4: memref<1x128xf32, #tpu.memory_space<vmem>>, %arg5: memref<1x128xf32, #tpu.memory_space<vmem>>, %arg6: memref<1x128xf32, #tpu.memory_space<vmem>>, %arg7: memref<1x128xf32, #tpu.memory_space<vmem>>, %arg8: memref<128x32xf32, #tpu.memory_space<vmem>>, %arg9: memref<1x32xf32, #tpu.memory_space<vmem>>, %arg10: memref<1x32xf32, #tpu.memory_space<vmem>>, %arg11: memref<1x32xf32, #tpu.memory_space<vmem>>, %arg12: memref<1x32xf32, #tpu.memory_space<vmem>>, %arg13: memref<1x8x32xf32, #tpu.memory_space<vmem>>) attributes {dimension_semantics = [#tpu.dimension_semantics<parallel>], iteration_bounds = array<i64: 2>, scalar_prefetch = 0 : i64, scratch_operands = 0 : i64, tpu.core_type = #tpu.core_type<tc>, window_params = [{pipeline_mode = #tpu.pipeline_mode<synchronous>, transform_indices = @transform_0, window_bounds = array<i64: 1, 2>}, {transform_indices = @transform_1, window_bounds = array<i64: 1, 8, 32>}, {pipeline_mode = #tpu.pipeline_mode<synchronous>, transform_indices = @transform_2, window_bounds = array<i64: 32, 128>}, {pipeline_mode = #tpu.pipeline_mode<synchronous>, transform_indices = @transform_3, window_bounds = array<i64: 1, 128>}, {pipeline_mode = #tpu.pipeline_mode<synchronous>, transform_indices = @transform_4, window_bounds = array<i64: 1, 128>}, {pipeline_mode = #tpu.pipeline_mode<synchronous>, transform_indices = @transform_5, window_bounds = array<i64: 1, 128>}, {pipeline_mode = #tpu.pipeline_mode<synchronous>, transform_indices = @transform_6, window_bounds = array<i64: 1, 128>}, {pipeline_mode = #tpu.pipeline_mode<synchronous>, transform_indices = @transform_7, window_bounds = array<i64: 128, 32>}, {pipeline_mode = #tpu.pipeline_mode<synchronous>, transform_indices = @transform_8, window_bounds = array<i64: 1, 32>}, {pipeline_mode = #tpu.pipeline_mode<synchronous>, transform_indices = @transform_9, window_bounds = array<i64: 1, 32>}, {pipeline_mode = #tpu.pipeline_mode<synchronous>, transform_indices = @transform_10, window_bounds = array<i64: 1, 32>}, {pipeline_mode = #tpu.pipeline_mode<synchronous>, transform_indices = @transform_11, window_bounds = array<i64: 1, 32>}, {transform_indices = @transform_12, window_bounds = array<i64: 1, 8, 32>}]} {
    %c0 = arith.constant 0 : index
    %c0_0 = arith.constant 0 : index
    %c0_1 = arith.constant 0 : index
    %0 = vector.load %arg2[%c0, %c0_0, %c0_1] : memref<1x8x32xf32, #tpu.memory_space<vmem>>, vector<1x8x32xf32>
    %1 = vector.shape_cast %0 : vector<1x8x32xf32> to vector<8x32xf32>
    %c0_2 = arith.constant 0 : index
    %c0_3 = arith.constant 0 : index
    %2 = vector.load %arg3[%c0_2, %c0_3] : memref<32x128xf32, #tpu.memory_space<vmem>>, vector<32x128xf32>
    %cst = arith.constant dense<0.000000e+00> : vector<8x128xf32>
    %3 = tpu.matmul %1, %2, %cst {dimension_numbers = #tpu.dot_dimension_numbers<[1], [0], [0], [1], [0, 0, 1, 1], [], []>} : vector<8x32xf32>, vector<32x128xf32>, vector<8x128xf32> -> vector<8x128xf32>
    %c0_4 = arith.constant 0 : index
    %c0_5 = arith.constant 0 : index
    %4 = vector.load %arg4[%c0_4, %c0_5] : memref<1x128xf32, #tpu.memory_space<vmem>>, vector<1x128xf32>
    %5 = vector.broadcast %4 : vector<1x128xf32> to vector<8x128xf32>
    %6 = arith.addf %3, %5 : vector<8x128xf32>
    %c0_6 = arith.constant 0 : index
    %c0_7 = arith.constant 0 : index
    %7 = vector.load %arg5[%c0_6, %c0_7] : memref<1x128xf32, #tpu.memory_space<vmem>>, vector<1x128xf32>
    %c0_8 = arith.constant 0 : index
    %c0_9 = arith.constant 0 : index
    %8 = vector.load %arg6[%c0_8, %c0_9] : memref<1x128xf32, #tpu.memory_space<vmem>>, vector<1x128xf32>
    %c0_10 = arith.constant 0 : index
    %c0_11 = arith.constant 0 : index
    %9 = vector.load %arg7[%c0_10, %c0_11] : memref<1x128xf32, #tpu.memory_space<vmem>>, vector<1x128xf32>
    %c0_12 = arith.constant 0 : index
    %c0_13 = arith.constant 0 : index
    %10 = vector.load %arg1[%c0_12, %c0_13] : memref<1x2xf32, #tpu.memory_space<vmem>>, vector<1x1xf32>
    %11 = vector.extract %10[0, 0] : f32 from vector<1x1xf32>
    %cst_14 = arith.constant dense<0.000000e+00> : vector<8xf32>
    %12 = vector.multi_reduction <add>, %6, %cst_14 [1] : vector<8x128xf32> to vector<8xf32>
    %13 = vector.shape_cast %12 : vector<8xf32> to vector<8x1xf32>
    %cst_15 = arith.constant 1.280000e+02 : f32
    %14 = vector.broadcast %cst_15 : f32 to vector<8x1xf32>
    %15 = arith.divf %13, %14 : vector<8x1xf32>
    %16 = vector.broadcast %15 : vector<8x1xf32> to vector<8x128xf32>
    %17 = arith.subf %6, %16 : vector<8x128xf32>
    %18 = arith.mulf %17, %17 : vector<8x128xf32>
    %cst_16 = arith.constant dense<0.000000e+00> : vector<8xf32>
    %19 = vector.multi_reduction <add>, %18, %cst_16 [1] : vector<8x128xf32> to vector<8xf32>
    %20 = vector.shape_cast %19 : vector<8xf32> to vector<8x1xf32>
    %cst_17 = arith.constant 1.280000e+02 : f32
    %21 = vector.broadcast %cst_17 : f32 to vector<8x1xf32>
    %22 = arith.divf %20, %21 : vector<8x1xf32>
    %cst_18 = arith.constant 9.99999974E-6 : f32
    %23 = vector.broadcast %cst_18 : f32 to vector<8x1xf32>
    %24 = arith.addf %22, %23 : vector<8x1xf32>
    %25 = math.rsqrt %24 : vector<8x1xf32>
    %26 = vector.broadcast %25 : vector<8x1xf32> to vector<8x128xf32>
    %27 = arith.mulf %17, %26 : vector<8x128xf32>
    %28 = vector.broadcast %7 : vector<1x128xf32> to vector<8x128xf32>
    %29 = arith.mulf %27, %28 : vector<8x128xf32>
    %30 = vector.broadcast %8 : vector<1x128xf32> to vector<8x128xf32>
    %31 = arith.addf %29, %30 : vector<8x128xf32>
    %32 = math.absf %31 : vector<8x128xf32>
    %33 = vector.broadcast %9 : vector<1x128xf32> to vector<8x128xf32>
    %34 = arith.subf %32, %33 : vector<8x128xf32>
    %35 = arith.negf %34 : vector<8x128xf32>
    %36 = math.exp %35 : vector<8x128xf32>
    %cst_19 = arith.constant 1.000000e+00 : f32
    %37 = vector.broadcast %cst_19 : f32 to vector<8x128xf32>
    %38 = arith.addf %37, %36 : vector<8x128xf32>
    %39 = arith.divf %37, %38 : vector<8x128xf32>
    %40 = arith.mulf %39, %6 : vector<8x128xf32>
    %41 = vector.broadcast %11 : f32 to vector<8x128xf32>
    %42 = arith.mulf %41, %40 : vector<8x128xf32>
    %cst_20 = arith.constant 1.000000e+00 : f32
    %43 = arith.subf %cst_20, %11 : f32
    %44 = vector.broadcast %43 : f32 to vector<8x128xf32>
    %45 = arith.mulf %44, %6 : vector<8x128xf32>
    %46 = arith.addf %42, %45 : vector<8x128xf32>
    %cst_21 = arith.constant -1.000000e+02 : f32
    %cst_22 = arith.constant 1.000000e+02 : f32
    %47 = vector.broadcast %cst_21 : f32 to vector<8x128xf32>
    %48 = arith.maximumf %47, %46 : vector<8x128xf32>
    %49 = vector.broadcast %cst_22 : f32 to vector<8x128xf32>
    %50 = arith.minimumf %49, %48 : vector<8x128xf32>
    %cst_23 = arith.constant 5.000000e-01 : f32
    %51 = vector.broadcast %cst_23 : f32 to vector<8x128xf32>
    %52 = arith.mulf %51, %50 : vector<8x128xf32>
    %cst_24 = arith.constant 0.707106769 : f32
    %53 = vector.broadcast %cst_24 : f32 to vector<8x128xf32>
    %54 = arith.mulf %50, %53 : vector<8x128xf32>
    %55 = math.absf %54 : vector<8x128xf32>
    %cst_25 = arith.constant 0.327591091 : f32
    %56 = vector.broadcast %cst_25 : f32 to vector<8x128xf32>
    %57 = arith.mulf %56, %55 : vector<8x128xf32>
    %cst_26 = arith.constant 1.000000e+00 : f32
    %58 = vector.broadcast %cst_26 : f32 to vector<8x128xf32>
    %59 = arith.addf %58, %57 : vector<8x128xf32>
    %cst_27 = arith.constant 1.000000e+00 : f32
    %60 = vector.broadcast %cst_27 : f32 to vector<8x128xf32>
    %61 = arith.divf %60, %59 : vector<8x128xf32>
    %cst_28 = arith.constant 1.06140542 : f32
    %62 = vector.broadcast %cst_28 : f32 to vector<8x128xf32>
    %63 = arith.mulf %62, %61 : vector<8x128xf32>
    %cst_29 = arith.constant -1.45315206 : f32
    %64 = vector.broadcast %cst_29 : f32 to vector<8x128xf32>
    %65 = arith.addf %63, %64 : vector<8x128xf32>
    %66 = arith.mulf %65, %61 : vector<8x128xf32>
    %cst_30 = arith.constant 1.42141378 : f32
    %67 = vector.broadcast %cst_30 : f32 to vector<8x128xf32>
    %68 = arith.addf %66, %67 : vector<8x128xf32>
    %69 = arith.mulf %68, %61 : vector<8x128xf32>
    %cst_31 = arith.constant -0.284496725 : f32
    %70 = vector.broadcast %cst_31 : f32 to vector<8x128xf32>
    %71 = arith.addf %69, %70 : vector<8x128xf32>
    %72 = arith.mulf %71, %61 : vector<8x128xf32>
    %cst_32 = arith.constant 0.254829586 : f32
    %73 = vector.broadcast %cst_32 : f32 to vector<8x128xf32>
    %74 = arith.addf %72, %73 : vector<8x128xf32>
    %75 = arith.mulf %74, %61 : vector<8x128xf32>
    %cst_33 = arith.constant 0.000000e+00 : f32
    %76 = vector.broadcast %cst_33 : f32 to vector<8x128xf32>
    %77 = arith.subf %76, %55 : vector<8x128xf32>
    %78 = arith.mulf %77, %55 : vector<8x128xf32>
    %79 = math.exp %78 : vector<8x128xf32>
    %80 = arith.mulf %75, %79 : vector<8x128xf32>
    %cst_34 = arith.constant 1.000000e+00 : f32
    %81 = vector.broadcast %cst_34 : f32 to vector<8x128xf32>
    %82 = arith.subf %81, %80 : vector<8x128xf32>
    %cst_35 = arith.constant 0.000000e+00 : f32
    %83 = vector.broadcast %cst_35 : f32 to vector<8x128xf32>
    %84 = arith.cmpf olt, %54, %83 : vector<8x128xf32>
    %cst_36 = arith.constant 0.000000e+00 : f32
    %85 = vector.broadcast %cst_36 : f32 to vector<8x128xf32>
    %86 = arith.subf %85, %82 : vector<8x128xf32>
    %87 = arith.select %84, %86, %82 : vector<8x128xi1>, vector<8x128xf32>
    %cst_37 = arith.constant 1.000000e+00 : f32
    %88 = vector.broadcast %cst_37 : f32 to vector<8x128xf32>
    %89 = arith.addf %88, %87 : vector<8x128xf32>
    %90 = arith.mulf %52, %89 : vector<8x128xf32>
    %c0_38 = arith.constant 0 : index
    %c0_39 = arith.constant 0 : index
    %91 = vector.load %arg8[%c0_38, %c0_39] : memref<128x32xf32, #tpu.memory_space<vmem>>, vector<128x32xf32>
    %cst_40 = arith.constant dense<0.000000e+00> : vector<8x32xf32>
    %92 = tpu.matmul %90, %91, %cst_40 {dimension_numbers = #tpu.dot_dimension_numbers<[1], [0], [0], [1], [0, 0, 1, 1], [], []>} : vector<8x128xf32>, vector<128x32xf32>, vector<8x32xf32> -> vector<8x32xf32>
    %c0_41 = arith.constant 0 : index
    %c0_42 = arith.constant 0 : index
    %93 = vector.load %arg9[%c0_41, %c0_42] : memref<1x32xf32, #tpu.memory_space<vmem>>, vector<1x32xf32>
    %94 = vector.broadcast %93 : vector<1x32xf32> to vector<8x32xf32>
    %95 = arith.addf %92, %94 : vector<8x32xf32>
    %c0_43 = arith.constant 0 : index
    %c0_44 = arith.constant 0 : index
    %96 = vector.load %arg10[%c0_43, %c0_44] : memref<1x32xf32, #tpu.memory_space<vmem>>, vector<1x32xf32>
    %c0_45 = arith.constant 0 : index
    %c0_46 = arith.constant 0 : index
    %97 = vector.load %arg11[%c0_45, %c0_46] : memref<1x32xf32, #tpu.memory_space<vmem>>, vector<1x32xf32>
    %c0_47 = arith.constant 0 : index
    %c0_48 = arith.constant 0 : index
    %98 = vector.load %arg12[%c0_47, %c0_48] : memref<1x32xf32, #tpu.memory_space<vmem>>, vector<1x32xf32>
    %c0_49 = arith.constant 0 : index
    %c1 = arith.constant 1 : index
    %99 = vector.load %arg1[%c0_49, %c1] : memref<1x2xf32, #tpu.memory_space<vmem>>, vector<1x1xf32>
    %100 = vector.extract %99[0, 0] : f32 from vector<1x1xf32>
    %cst_50 = arith.constant dense<0.000000e+00> : vector<8xf32>
    %101 = vector.multi_reduction <add>, %95, %cst_50 [1] : vector<8x32xf32> to vector<8xf32>
    %102 = vector.shape_cast %101 : vector<8xf32> to vector<8x1xf32>
    %cst_51 = arith.constant 3.200000e+01 : f32
    %103 = vector.broadcast %cst_51 : f32 to vector<8x1xf32>
    %104 = arith.divf %102, %103 : vector<8x1xf32>
    %105 = vector.broadcast %104 : vector<8x1xf32> to vector<8x32xf32>
    %106 = arith.subf %95, %105 : vector<8x32xf32>
    %107 = arith.mulf %106, %106 : vector<8x32xf32>
    %cst_52 = arith.constant dense<0.000000e+00> : vector<8xf32>
    %108 = vector.multi_reduction <add>, %107, %cst_52 [1] : vector<8x32xf32> to vector<8xf32>
    %109 = vector.shape_cast %108 : vector<8xf32> to vector<8x1xf32>
    %cst_53 = arith.constant 3.200000e+01 : f32
    %110 = vector.broadcast %cst_53 : f32 to vector<8x1xf32>
    %111 = arith.divf %109, %110 : vector<8x1xf32>
    %cst_54 = arith.constant 9.99999974E-6 : f32
    %112 = vector.broadcast %cst_54 : f32 to vector<8x1xf32>
    %113 = arith.addf %111, %112 : vector<8x1xf32>
    %114 = math.rsqrt %113 : vector<8x1xf32>
    %115 = vector.broadcast %114 : vector<8x1xf32> to vector<8x32xf32>
    %116 = arith.mulf %106, %115 : vector<8x32xf32>
    %117 = vector.broadcast %96 : vector<1x32xf32> to vector<8x32xf32>
    %118 = arith.mulf %116, %117 : vector<8x32xf32>
    %119 = vector.broadcast %97 : vector<1x32xf32> to vector<8x32xf32>
    %120 = arith.addf %118, %119 : vector<8x32xf32>
    %121 = math.absf %120 : vector<8x32xf32>
    %122 = vector.broadcast %98 : vector<1x32xf32> to vector<8x32xf32>
    %123 = arith.subf %121, %122 : vector<8x32xf32>
    %124 = arith.negf %123 : vector<8x32xf32>
    %125 = math.exp %124 : vector<8x32xf32>
    %cst_55 = arith.constant 1.000000e+00 : f32
    %126 = vector.broadcast %cst_55 : f32 to vector<8x32xf32>
    %127 = arith.addf %126, %125 : vector<8x32xf32>
    %128 = arith.divf %126, %127 : vector<8x32xf32>
    %129 = arith.mulf %128, %95 : vector<8x32xf32>
    %130 = vector.broadcast %100 : f32 to vector<8x32xf32>
    %131 = arith.mulf %130, %129 : vector<8x32xf32>
    %cst_56 = arith.constant 1.000000e+00 : f32
    %132 = arith.subf %cst_56, %100 : f32
    %133 = vector.broadcast %132 : f32 to vector<8x32xf32>
    %134 = arith.mulf %133, %95 : vector<8x32xf32>
    %135 = arith.addf %131, %134 : vector<8x32xf32>
    %cst_57 = arith.constant -1.000000e+02 : f32
    %cst_58 = arith.constant 1.000000e+02 : f32
    %136 = vector.broadcast %cst_57 : f32 to vector<8x32xf32>
    %137 = arith.maximumf %136, %135 : vector<8x32xf32>
    %138 = vector.broadcast %cst_58 : f32 to vector<8x32xf32>
    %139 = arith.minimumf %138, %137 : vector<8x32xf32>
    %140 = arith.addf %1, %139 : vector<8x32xf32>
    %c0_59 = arith.constant 0 : index
    %c0_60 = arith.constant 0 : index
    %c0_61 = arith.constant 0 : index
    %141 = vector.load %arg13[%c0_59, %c0_60, %c0_61] : memref<1x8x32xf32, #tpu.memory_space<vmem>>, vector<1x8x32xf32>
    %142 = vector.shape_cast %141 : vector<1x8x32xf32> to vector<8x32xf32>
    %143 = vector.shape_cast %140 : vector<8x32xf32> to vector<1x8x32xf32>
    tpu.vector_store %arg13[%c0_59, %c0_60, %c0_61], %143 {strides = array<i32>} : memref<1x8x32xf32, #tpu.memory_space<vmem>>, vector<1x8x32xf32>,
    return
  }
  func.func @transform_0(%arg0: i32) -> (i32, i32) {
    %c0_i32 = arith.constant 0 : i32
    %c0_i32_0 = arith.constant 0 : i32
    %c0_i32_1 = arith.constant 0 : i32
    return %c0_i32, %c0_i32_0 : i32, i32
  }
  func.func @transform_1(%arg0: i32) -> (i32, i32, i32) {
    %c0_i32 = arith.constant 0 : i32
    %c0_i32_0 = arith.constant 0 : i32
    %c0_i32_1 = arith.constant 0 : i32
    return %arg0, %c0_i32, %c0_i32_0 : i32, i32, i32
  }
  func.func @transform_2(%arg0: i32) -> (i32, i32) {
    %c0_i32 = arith.constant 0 : i32
    %c0_i32_0 = arith.constant 0 : i32
    %c0_i32_1 = arith.constant 0 : i32
    return %c0_i32, %c0_i32_0 : i32, i32
  }
  func.func @transform_3(%arg0: i32) -> (i32, i32) {
    %c0_i32 = arith.constant 0 : i32
    %c0_i32_0 = arith.constant 0 : i32
    %c0_i32_1 = arith.constant 0 : i32
    return %c0_i32, %c0_i32_0 : i32, i32
  }
  func.func @transform_4(%arg0: i32) -> (i32, i32) {
    %c0_i32 = arith.constant 0 : i32
    %c0_i32_0 = arith.constant 0 : i32
    %c0_i32_1 = arith.constant 0 : i32
    return %c0_i32, %c0_i32_0 : i32, i32
  }
  func.func @transform_5(%arg0: i32) -> (i32, i32) {
    %c0_i32 = arith.constant 0 : i32
    %c0_i32_0 = arith.constant 0 : i32
    %c0_i32_1 = arith.constant 0 : i32
    return %c0_i32, %c0_i32_0 : i32, i32
  }
  func.func @transform_6(%arg0: i32) -> (i32, i32) {
    %c0_i32 = arith.constant 0 : i32
    %c0_i32_0 = arith.constant 0 : i32
    %c0_i32_1 = arith.constant 0 : i32
    return %c0_i32, %c0_i32_0 : i32, i32
  }
  func.func @transform_7(%arg0: i32) -> (i32, i32) {
    %c0_i32 = arith.constant 0 : i32
    %c0_i32_0 = arith.constant 0 : i32
    %c0_i32_1 = arith.constant 0 : i32
    return %c0_i32, %c0_i32_0 : i32, i32
  }
  func.func @transform_8(%arg0: i32) -> (i32, i32) {
    %c0_i32 = arith.constant 0 : i32
    %c0_i32_0 = arith.constant 0 : i32
    %c0_i32_1 = arith.constant 0 : i32
    return %c0_i32, %c0_i32_0 : i32, i32
  }
  func.func @transform_9(%arg0: i32) -> (i32, i32) {
    %c0_i32 = arith.constant 0 : i32
    %c0_i32_0 = arith.constant 0 : i32
    %c0_i32_1 = arith.constant 0 : i32
    return %c0_i32, %c0_i32_0 : i32, i32
  }
  func.func @transform_10(%arg0: i32) -> (i32, i32) {
    %c0_i32 = arith.constant 0 : i32
    %c0_i32_0 = arith.constant 0 : i32
    %c0_i32_1 = arith.constant 0 : i32
    return %c0_i32, %c0_i32_0 : i32, i32
  }
  func.func @transform_11(%arg0: i32) -> (i32, i32) {
    %c0_i32 = arith.constant 0 : i32
    %c0_i32_0 = arith.constant 0 : i32
    %c0_i32_1 = arith.constant 0 : i32
    return %c0_i32, %c0_i32_0 : i32, i32
  }
  func.func @transform_12(%arg0: i32) -> (i32, i32, i32) {
    %c0_i32 = arith.constant 0 : i32
    %c0_i32_0 = arith.constant 0 : i32
    %c0_i32_1 = arith.constant 0 : i32
    return %arg0, %c0_i32, %c0_i32_0 : i32, i32, i32
  }
}

module attributes {stable_mosaic.version = 11 : i64} {
  func.func @_attn_block_kernel(%arg0: i32, %arg1: memref<1x6xf32, #tpu.memory_space<vmem>>, %arg2: memref<1x8x32xf32, #tpu.memory_space<vmem>>, %arg3: memref<32x96xf32, #tpu.memory_space<vmem>>, %arg4: memref<1x96xf32, #tpu.memory_space<vmem>>, %arg5: memref<32x32xf32, #tpu.memory_space<vmem>>, %arg6: memref<1x32xf32, #tpu.memory_space<vmem>>, %arg7: memref<1x32xf32, #tpu.memory_space<vmem>>, %arg8: memref<1x32xf32, #tpu.memory_space<vmem>>, %arg9: memref<1x32xf32, #tpu.memory_space<vmem>>, %arg10: memref<1x8x32xf32, #tpu.memory_space<vmem>>) attributes {dimension_semantics = [#tpu.dimension_semantics<parallel>], iteration_bounds = array<i64: 2>, scalar_prefetch = 0 : i64, scratch_operands = 0 : i64, tpu.core_type = #tpu.core_type<tc>, window_params = [{pipeline_mode = #tpu.pipeline_mode<synchronous>, transform_indices = @transform_0, window_bounds = array<i64: 1, 6>}, {transform_indices = @transform_1, window_bounds = array<i64: 1, 8, 32>}, {pipeline_mode = #tpu.pipeline_mode<synchronous>, transform_indices = @transform_2, window_bounds = array<i64: 32, 96>}, {pipeline_mode = #tpu.pipeline_mode<synchronous>, transform_indices = @transform_3, window_bounds = array<i64: 1, 96>}, {pipeline_mode = #tpu.pipeline_mode<synchronous>, transform_indices = @transform_4, window_bounds = array<i64: 32, 32>}, {pipeline_mode = #tpu.pipeline_mode<synchronous>, transform_indices = @transform_5, window_bounds = array<i64: 1, 32>}, {pipeline_mode = #tpu.pipeline_mode<synchronous>, transform_indices = @transform_6, window_bounds = array<i64: 1, 32>}, {pipeline_mode = #tpu.pipeline_mode<synchronous>, transform_indices = @transform_7, window_bounds = array<i64: 1, 32>}, {pipeline_mode = #tpu.pipeline_mode<synchronous>, transform_indices = @transform_8, window_bounds = array<i64: 1, 32>}, {transform_indices = @transform_9, window_bounds = array<i64: 1, 8, 32>}]} {
    %c0 = arith.constant 0 : index
    %c0_0 = arith.constant 0 : index
    %c0_1 = arith.constant 0 : index
    %0 = vector.load %arg2[%c0, %c0_0, %c0_1] : memref<1x8x32xf32, #tpu.memory_space<vmem>>, vector<1x8x32xf32>
    %1 = vector.shape_cast %0 : vector<1x8x32xf32> to vector<8x32xf32>
    %c0_2 = arith.constant 0 : index
    %c0_3 = arith.constant 0 : index
    %2 = vector.load %arg3[%c0_2, %c0_3] : memref<32x96xf32, #tpu.memory_space<vmem>>, vector<32x96xf32>
    %cst = arith.constant dense<0.000000e+00> : vector<8x96xf32>
    %3 = tpu.matmul %1, %2, %cst {dimension_numbers = #tpu.dot_dimension_numbers<[1], [0], [0], [1], [0, 0, 1, 1], [], []>} : vector<8x32xf32>, vector<32x96xf32>, vector<8x96xf32> -> vector<8x96xf32>
    %c0_4 = arith.constant 0 : index
    %c0_5 = arith.constant 0 : index
    %4 = vector.load %arg4[%c0_4, %c0_5] : memref<1x96xf32, #tpu.memory_space<vmem>>, vector<1x96xf32>
    %5 = vector.broadcast %4 : vector<1x96xf32> to vector<8x96xf32>
    %6 = arith.addf %3, %5 : vector<8x96xf32>
    %c0_6 = arith.constant 0 : index
    %c0_7 = arith.constant 0 : index
    %7 = vector.load %arg5[%c0_6, %c0_7] : memref<32x32xf32, #tpu.memory_space<vmem>>, vector<32x32xf32>
    %c0_8 = arith.constant 0 : index
    %c0_9 = arith.constant 0 : index
    %8 = vector.load %arg1[%c0_8, %c0_9] : memref<1x6xf32, #tpu.memory_space<vmem>>, vector<1x1xf32>
    %9 = vector.extract %8[0, 0] : f32 from vector<1x1xf32>
    %10 = tpu.iota {dimensions = array<i32: 0>} : vector<8x8xi32>
    %11 = tpu.iota {dimensions = array<i32: 1>} : vector<8x8xi32>
    %12 = arith.cmpi sgt, %11, %10 : vector<8x8xi32>
    %cst_10 = arith.constant 0.000000e+00 : f32
    %13 = vector.broadcast %cst_10 : f32 to vector<8x32xf32>
    %14 = vector.extract_strided_slice %6 {offsets = [0, 0], sizes = [8, 8], strides = [1, 1]} : vector<8x96xf32> to vector<8x8xf32>
    %15 = vector.extract_strided_slice %6 {offsets = [0, 32], sizes = [8, 8], strides = [1, 1]} : vector<8x96xf32> to vector<8x8xf32>
    %16 = vector.extract_strided_slice %6 {offsets = [0, 64], sizes = [8, 8], strides = [1, 1]} : vector<8x96xf32> to vector<8x8xf32>
    %cst_11 = arith.constant dense<0.000000e+00> : vector<8x8xf32>
    %17 = tpu.matmul %14, %15, %cst_11 {dimension_numbers = #tpu.dot_dimension_numbers<[1], [1], [0], [0], [0, 0, 1, 0], [], []>} : vector<8x8xf32>, vector<8x8xf32>, vector<8x8xf32> -> vector<8x8xf32>
    %18 = vector.broadcast %9 : f32 to vector<8x8xf32>
    %19 = arith.mulf %17, %18 : vector<8x8xf32>
    %cst_12 = arith.constant 0xFF800000 : f32
    %20 = vector.broadcast %cst_12 : f32 to vector<8x8xf32>
    %21 = arith.select %12, %20, %19 : vector<8x8xi1>, vector<8x8xf32>
    %cst_13 = arith.constant dense<true> : vector<8x8xi1>
    %22 = arith.xori %12, %cst_13 : vector<8x8xi1>
    %c0_14 = arith.constant 0 : index
    %c2 = arith.constant 2 : index
    %23 = vector.load %arg1[%c0_14, %c2] : memref<1x6xf32, #tpu.memory_space<vmem>>, vector<1x1xf32>
    %24 = vector.extract %23[0, 0] : f32 from vector<1x1xf32>
    %25 = vector.broadcast %24 : f32 to vector<8x8xf32>
    %26 = arith.cmpf olt, %21, %25 : vector<8x8xf32>
    %27 = arith.andi %22, %26 : vector<8x8xi1>
    %cst_15 = arith.constant -1.000000e+04 : f32
    %28 = vector.broadcast %cst_15 : f32 to vector<8x8xf32>
    %29 = arith.select %27, %28, %21 : vector<8x8xi1>, vector<8x8xf32>
    %cst_16 = arith.constant dense<0xFF800000> : vector<8xf32>
    %30 = vector.multi_reduction <maximumf>, %29, %cst_16 [1] : vector<8x8xf32> to vector<8xf32>
    %31 = vector.shape_cast %30 : vector<8xf32> to vector<8x1xf32>
    %32 = vector.broadcast %31 : vector<8x1xf32> to vector<8x8xf32>
    %33 = arith.subf %29, %32 : vector<8x8xf32>
    %34 = math.exp %33 : vector<8x8xf32>
    %cst_17 = arith.constant dense<0.000000e+00> : vector<8xf32>
    %35 = vector.multi_reduction <add>, %34, %cst_17 [1] : vector<8x8xf32> to vector<8xf32>
    %36 = vector.shape_cast %35 : vector<8xf32> to vector<8x1xf32>
    %37 = vector.broadcast %36 : vector<8x1xf32> to vector<8x8xf32>
    %38 = arith.divf %34, %37 : vector<8x8xf32>
    %cst_18 = arith.constant dense<0.000000e+00> : vector<8x8xf32>
    %39 = tpu.matmul %38, %16, %cst_18 {dimension_numbers = #tpu.dot_dimension_numbers<[1], [0], [0], [1], [0, 0, 1, 1], [], []>} : vector<8x8xf32>, vector<8x8xf32>, vector<8x8xf32> -> vector<8x8xf32>
    %40 = vector.extract_strided_slice %7 {offsets = [0, 0], sizes = [8, 32], strides = [1, 1]} : vector<32x32xf32> to vector<8x32xf32>
    %cst_19 = arith.constant dense<0.000000e+00> : vector<8x32xf32>
    %41 = tpu.matmul %39, %40, %cst_19 {dimension_numbers = #tpu.dot_dimension_numbers<[1], [0], [0], [1], [0, 0, 1, 1], [], []>} : vector<8x8xf32>, vector<8x32xf32>, vector<8x32xf32> -> vector<8x32xf32>
    %42 = arith.addf %13, %41 : vector<8x32xf32>
    %43 = vector.extract_strided_slice %6 {offsets = [0, 8], sizes = [8, 8], strides = [1, 1]} : vector<8x96xf32> to vector<8x8xf32>
    %44 = vector.extract_strided_slice %6 {offsets = [0, 40], sizes = [8, 8], strides = [1, 1]} : vector<8x96xf32> to vector<8x8xf32>
    %45 = vector.extract_strided_slice %6 {offsets = [0, 72], sizes = [8, 8], strides = [1, 1]} : vector<8x96xf32> to vector<8x8xf32>
    %cst_20 = arith.constant dense<0.000000e+00> : vector<8x8xf32>
    %46 = tpu.matmul %43, %44, %cst_20 {dimension_numbers = #tpu.dot_dimension_numbers<[1], [1], [0], [0], [0, 0, 1, 0], [], []>} : vector<8x8xf32>, vector<8x8xf32>, vector<8x8xf32> -> vector<8x8xf32>
    %47 = vector.broadcast %9 : f32 to vector<8x8xf32>
    %48 = arith.mulf %46, %47 : vector<8x8xf32>
    %cst_21 = arith.constant 0xFF800000 : f32
    %49 = vector.broadcast %cst_21 : f32 to vector<8x8xf32>
    %50 = arith.select %12, %49, %48 : vector<8x8xi1>, vector<8x8xf32>
    %cst_22 = arith.constant dense<true> : vector<8x8xi1>
    %51 = arith.xori %12, %cst_22 : vector<8x8xi1>
    %c0_23 = arith.constant 0 : index
    %c3 = arith.constant 3 : index
    %52 = vector.load %arg1[%c0_23, %c3] : memref<1x6xf32, #tpu.memory_space<vmem>>, vector<1x1xf32>
    %53 = vector.extract %52[0, 0] : f32 from vector<1x1xf32>
    %54 = vector.broadcast %53 : f32 to vector<8x8xf32>
    %55 = arith.cmpf olt, %50, %54 : vector<8x8xf32>
    %56 = arith.andi %51, %55 : vector<8x8xi1>
    %cst_24 = arith.constant -1.000000e+04 : f32
    %57 = vector.broadcast %cst_24 : f32 to vector<8x8xf32>
    %58 = arith.select %56, %57, %50 : vector<8x8xi1>, vector<8x8xf32>
    %cst_25 = arith.constant dense<0xFF800000> : vector<8xf32>
    %59 = vector.multi_reduction <maximumf>, %58, %cst_25 [1] : vector<8x8xf32> to vector<8xf32>
    %60 = vector.shape_cast %59 : vector<8xf32> to vector<8x1xf32>
    %61 = vector.broadcast %60 : vector<8x1xf32> to vector<8x8xf32>
    %62 = arith.subf %58, %61 : vector<8x8xf32>
    %63 = math.exp %62 : vector<8x8xf32>
    %cst_26 = arith.constant dense<0.000000e+00> : vector<8xf32>
    %64 = vector.multi_reduction <add>, %63, %cst_26 [1] : vector<8x8xf32> to vector<8xf32>
    %65 = vector.shape_cast %64 : vector<8xf32> to vector<8x1xf32>
    %66 = vector.broadcast %65 : vector<8x1xf32> to vector<8x8xf32>
    %67 = arith.divf %63, %66 : vector<8x8xf32>
    %cst_27 = arith.constant dense<0.000000e+00> : vector<8x8xf32>
    %68 = tpu.matmul %67, %45, %cst_27 {dimension_numbers = #tpu.dot_dimension_numbers<[1], [0], [0], [1], [0, 0, 1, 1], [], []>} : vector<8x8xf32>, vector<8x8xf32>, vector<8x8xf32> -> vector<8x8xf32>
    %69 = vector.extract_strided_slice %7 {offsets = [8, 0], sizes = [8, 32], strides = [1, 1]} : vector<32x32xf32> to vector<8x32xf32>
    %cst_28 = arith.constant dense<0.000000e+00> : vector<8x32xf32>
    %70 = tpu.matmul %68, %69, %cst_28 {dimension_numbers = #tpu.dot_dimension_numbers<[1], [0], [0], [1], [0, 0, 1, 1], [], []>} : vector<8x8xf32>, vector<8x32xf32>, vector<8x32xf32> -> vector<8x32xf32>
    %71 = arith.addf %42, %70 : vector<8x32xf32>
    %72 = vector.extract_strided_slice %6 {offsets = [0, 16], sizes = [8, 8], strides = [1, 1]} : vector<8x96xf32> to vector<8x8xf32>
    %73 = vector.extract_strided_slice %6 {offsets = [0, 48], sizes = [8, 8], strides = [1, 1]} : vector<8x96xf32> to vector<8x8xf32>
    %74 = vector.extract_strided_slice %6 {offsets = [0, 80], sizes = [8, 8], strides = [1, 1]} : vector<8x96xf32> to vector<8x8xf32>
    %cst_29 = arith.constant dense<0.000000e+00> : vector<8x8xf32>
    %75 = tpu.matmul %72, %73, %cst_29 {dimension_numbers = #tpu.dot_dimension_numbers<[1], [1], [0], [0], [0, 0, 1, 0], [], []>} : vector<8x8xf32>, vector<8x8xf32>, vector<8x8xf32> -> vector<8x8xf32>
    %76 = vector.broadcast %9 : f32 to vector<8x8xf32>
    %77 = arith.mulf %75, %76 : vector<8x8xf32>
    %cst_30 = arith.constant 0xFF800000 : f32
    %78 = vector.broadcast %cst_30 : f32 to vector<8x8xf32>
    %79 = arith.select %12, %78, %77 : vector<8x8xi1>, vector<8x8xf32>
    %cst_31 = arith.constant dense<true> : vector<8x8xi1>
    %80 = arith.xori %12, %cst_31 : vector<8x8xi1>
    %c0_32 = arith.constant 0 : index
    %c4 = arith.constant 4 : index
    %81 = vector.load %arg1[%c0_32, %c4] : memref<1x6xf32, #tpu.memory_space<vmem>>, vector<1x1xf32>
    %82 = vector.extract %81[0, 0] : f32 from vector<1x1xf32>
    %83 = vector.broadcast %82 : f32 to vector<8x8xf32>
    %84 = arith.cmpf olt, %79, %83 : vector<8x8xf32>
    %85 = arith.andi %80, %84 : vector<8x8xi1>
    %cst_33 = arith.constant -1.000000e+04 : f32
    %86 = vector.broadcast %cst_33 : f32 to vector<8x8xf32>
    %87 = arith.select %85, %86, %79 : vector<8x8xi1>, vector<8x8xf32>
    %cst_34 = arith.constant dense<0xFF800000> : vector<8xf32>
    %88 = vector.multi_reduction <maximumf>, %87, %cst_34 [1] : vector<8x8xf32> to vector<8xf32>
    %89 = vector.shape_cast %88 : vector<8xf32> to vector<8x1xf32>
    %90 = vector.broadcast %89 : vector<8x1xf32> to vector<8x8xf32>
    %91 = arith.subf %87, %90 : vector<8x8xf32>
    %92 = math.exp %91 : vector<8x8xf32>
    %cst_35 = arith.constant dense<0.000000e+00> : vector<8xf32>
    %93 = vector.multi_reduction <add>, %92, %cst_35 [1] : vector<8x8xf32> to vector<8xf32>
    %94 = vector.shape_cast %93 : vector<8xf32> to vector<8x1xf32>
    %95 = vector.broadcast %94 : vector<8x1xf32> to vector<8x8xf32>
    %96 = arith.divf %92, %95 : vector<8x8xf32>
    %cst_36 = arith.constant dense<0.000000e+00> : vector<8x8xf32>
    %97 = tpu.matmul %96, %74, %cst_36 {dimension_numbers = #tpu.dot_dimension_numbers<[1], [0], [0], [1], [0, 0, 1, 1], [], []>} : vector<8x8xf32>, vector<8x8xf32>, vector<8x8xf32> -> vector<8x8xf32>
    %98 = vector.extract_strided_slice %7 {offsets = [16, 0], sizes = [8, 32], strides = [1, 1]} : vector<32x32xf32> to vector<8x32xf32>
    %cst_37 = arith.constant dense<0.000000e+00> : vector<8x32xf32>
    %99 = tpu.matmul %97, %98, %cst_37 {dimension_numbers = #tpu.dot_dimension_numbers<[1], [0], [0], [1], [0, 0, 1, 1], [], []>} : vector<8x8xf32>, vector<8x32xf32>, vector<8x32xf32> -> vector<8x32xf32>
    %100 = arith.addf %71, %99 : vector<8x32xf32>
    %101 = vector.extract_strided_slice %6 {offsets = [0, 24], sizes = [8, 8], strides = [1, 1]} : vector<8x96xf32> to vector<8x8xf32>
    %102 = vector.extract_strided_slice %6 {offsets = [0, 56], sizes = [8, 8], strides = [1, 1]} : vector<8x96xf32> to vector<8x8xf32>
    %103 = vector.extract_strided_slice %6 {offsets = [0, 88], sizes = [8, 8], strides = [1, 1]} : vector<8x96xf32> to vector<8x8xf32>
    %cst_38 = arith.constant dense<0.000000e+00> : vector<8x8xf32>
    %104 = tpu.matmul %101, %102, %cst_38 {dimension_numbers = #tpu.dot_dimension_numbers<[1], [1], [0], [0], [0, 0, 1, 0], [], []>} : vector<8x8xf32>, vector<8x8xf32>, vector<8x8xf32> -> vector<8x8xf32>
    %105 = vector.broadcast %9 : f32 to vector<8x8xf32>
    %106 = arith.mulf %104, %105 : vector<8x8xf32>
    %cst_39 = arith.constant 0xFF800000 : f32
    %107 = vector.broadcast %cst_39 : f32 to vector<8x8xf32>
    %108 = arith.select %12, %107, %106 : vector<8x8xi1>, vector<8x8xf32>
    %cst_40 = arith.constant dense<true> : vector<8x8xi1>
    %109 = arith.xori %12, %cst_40 : vector<8x8xi1>
    %c0_41 = arith.constant 0 : index
    %c5 = arith.constant 5 : index
    %110 = vector.load %arg1[%c0_41, %c5] : memref<1x6xf32, #tpu.memory_space<vmem>>, vector<1x1xf32>
    %111 = vector.extract %110[0, 0] : f32 from vector<1x1xf32>
    %112 = vector.broadcast %111 : f32 to vector<8x8xf32>
    %113 = arith.cmpf olt, %108, %112 : vector<8x8xf32>
    %114 = arith.andi %109, %113 : vector<8x8xi1>
    %cst_42 = arith.constant -1.000000e+04 : f32
    %115 = vector.broadcast %cst_42 : f32 to vector<8x8xf32>
    %116 = arith.select %114, %115, %108 : vector<8x8xi1>, vector<8x8xf32>
    %cst_43 = arith.constant dense<0xFF800000> : vector<8xf32>
    %117 = vector.multi_reduction <maximumf>, %116, %cst_43 [1] : vector<8x8xf32> to vector<8xf32>
    %118 = vector.shape_cast %117 : vector<8xf32> to vector<8x1xf32>
    %119 = vector.broadcast %118 : vector<8x1xf32> to vector<8x8xf32>
    %120 = arith.subf %116, %119 : vector<8x8xf32>
    %121 = math.exp %120 : vector<8x8xf32>
    %cst_44 = arith.constant dense<0.000000e+00> : vector<8xf32>
    %122 = vector.multi_reduction <add>, %121, %cst_44 [1] : vector<8x8xf32> to vector<8xf32>
    %123 = vector.shape_cast %122 : vector<8xf32> to vector<8x1xf32>
    %124 = vector.broadcast %123 : vector<8x1xf32> to vector<8x8xf32>
    %125 = arith.divf %121, %124 : vector<8x8xf32>
    %cst_45 = arith.constant dense<0.000000e+00> : vector<8x8xf32>
    %126 = tpu.matmul %125, %103, %cst_45 {dimension_numbers = #tpu.dot_dimension_numbers<[1], [0], [0], [1], [0, 0, 1, 1], [], []>} : vector<8x8xf32>, vector<8x8xf32>, vector<8x8xf32> -> vector<8x8xf32>
    %127 = vector.extract_strided_slice %7 {offsets = [24, 0], sizes = [8, 32], strides = [1, 1]} : vector<32x32xf32> to vector<8x32xf32>
    %cst_46 = arith.constant dense<0.000000e+00> : vector<8x32xf32>
    %128 = tpu.matmul %126, %127, %cst_46 {dimension_numbers = #tpu.dot_dimension_numbers<[1], [0], [0], [1], [0, 0, 1, 1], [], []>} : vector<8x8xf32>, vector<8x32xf32>, vector<8x32xf32> -> vector<8x32xf32>
    %129 = arith.addf %100, %128 : vector<8x32xf32>
    %c0_47 = arith.constant 0 : index
    %c0_48 = arith.constant 0 : index
    %130 = vector.load %arg6[%c0_47, %c0_48] : memref<1x32xf32, #tpu.memory_space<vmem>>, vector<1x32xf32>
    %131 = vector.broadcast %130 : vector<1x32xf32> to vector<8x32xf32>
    %132 = arith.addf %129, %131 : vector<8x32xf32>
    %c0_49 = arith.constant 0 : index
    %c0_50 = arith.constant 0 : index
    %133 = vector.load %arg7[%c0_49, %c0_50] : memref<1x32xf32, #tpu.memory_space<vmem>>, vector<1x32xf32>
    %c0_51 = arith.constant 0 : index
    %c0_52 = arith.constant 0 : index
    %134 = vector.load %arg8[%c0_51, %c0_52] : memref<1x32xf32, #tpu.memory_space<vmem>>, vector<1x32xf32>
    %c0_53 = arith.constant 0 : index
    %c0_54 = arith.constant 0 : index
    %135 = vector.load %arg9[%c0_53, %c0_54] : memref<1x32xf32, #tpu.memory_space<vmem>>, vector<1x32xf32>
    %c0_55 = arith.constant 0 : index
    %c1 = arith.constant 1 : index
    %136 = vector.load %arg1[%c0_55, %c1] : memref<1x6xf32, #tpu.memory_space<vmem>>, vector<1x1xf32>
    %137 = vector.extract %136[0, 0] : f32 from vector<1x1xf32>
    %cst_56 = arith.constant dense<0.000000e+00> : vector<8xf32>
    %138 = vector.multi_reduction <add>, %132, %cst_56 [1] : vector<8x32xf32> to vector<8xf32>
    %139 = vector.shape_cast %138 : vector<8xf32> to vector<8x1xf32>
    %cst_57 = arith.constant 3.200000e+01 : f32
    %140 = vector.broadcast %cst_57 : f32 to vector<8x1xf32>
    %141 = arith.divf %139, %140 : vector<8x1xf32>
    %142 = vector.broadcast %141 : vector<8x1xf32> to vector<8x32xf32>
    %143 = arith.subf %132, %142 : vector<8x32xf32>
    %144 = arith.mulf %143, %143 : vector<8x32xf32>
    %cst_58 = arith.constant dense<0.000000e+00> : vector<8xf32>
    %145 = vector.multi_reduction <add>, %144, %cst_58 [1] : vector<8x32xf32> to vector<8xf32>
    %146 = vector.shape_cast %145 : vector<8xf32> to vector<8x1xf32>
    %cst_59 = arith.constant 3.200000e+01 : f32
    %147 = vector.broadcast %cst_59 : f32 to vector<8x1xf32>
    %148 = arith.divf %146, %147 : vector<8x1xf32>
    %cst_60 = arith.constant 9.99999974E-6 : f32
    %149 = vector.broadcast %cst_60 : f32 to vector<8x1xf32>
    %150 = arith.addf %148, %149 : vector<8x1xf32>
    %151 = math.rsqrt %150 : vector<8x1xf32>
    %152 = vector.broadcast %151 : vector<8x1xf32> to vector<8x32xf32>
    %153 = arith.mulf %143, %152 : vector<8x32xf32>
    %154 = vector.broadcast %133 : vector<1x32xf32> to vector<8x32xf32>
    %155 = arith.mulf %153, %154 : vector<8x32xf32>
    %156 = vector.broadcast %134 : vector<1x32xf32> to vector<8x32xf32>
    %157 = arith.addf %155, %156 : vector<8x32xf32>
    %158 = math.absf %157 : vector<8x32xf32>
    %159 = vector.broadcast %135 : vector<1x32xf32> to vector<8x32xf32>
    %160 = arith.subf %158, %159 : vector<8x32xf32>
    %161 = arith.negf %160 : vector<8x32xf32>
    %162 = math.exp %161 : vector<8x32xf32>
    %cst_61 = arith.constant 1.000000e+00 : f32
    %163 = vector.broadcast %cst_61 : f32 to vector<8x32xf32>
    %164 = arith.addf %163, %162 : vector<8x32xf32>
    %165 = arith.divf %163, %164 : vector<8x32xf32>
    %166 = arith.mulf %165, %132 : vector<8x32xf32>
    %167 = vector.broadcast %137 : f32 to vector<8x32xf32>
    %168 = arith.mulf %167, %166 : vector<8x32xf32>
    %cst_62 = arith.constant 1.000000e+00 : f32
    %169 = arith.subf %cst_62, %137 : f32
    %170 = vector.broadcast %169 : f32 to vector<8x32xf32>
    %171 = arith.mulf %170, %132 : vector<8x32xf32>
    %172 = arith.addf %168, %171 : vector<8x32xf32>
    %cst_63 = arith.constant -1.000000e+02 : f32
    %cst_64 = arith.constant 1.000000e+02 : f32
    %173 = vector.broadcast %cst_63 : f32 to vector<8x32xf32>
    %174 = arith.maximumf %173, %172 : vector<8x32xf32>
    %175 = vector.broadcast %cst_64 : f32 to vector<8x32xf32>
    %176 = arith.minimumf %175, %174 : vector<8x32xf32>
    %177 = arith.addf %1, %176 : vector<8x32xf32>
    %c0_65 = arith.constant 0 : index
    %c0_66 = arith.constant 0 : index
    %c0_67 = arith.constant 0 : index
    %178 = vector.load %arg10[%c0_65, %c0_66, %c0_67] : memref<1x8x32xf32, #tpu.memory_space<vmem>>, vector<1x8x32xf32>
    %179 = vector.shape_cast %178 : vector<1x8x32xf32> to vector<8x32xf32>
    %180 = vector.shape_cast %177 : vector<8x32xf32> to vector<1x8x32xf32>
    tpu.vector_store %arg10[%c0_65, %c0_66, %c0_67], %180 {strides = array<i32>} : memref<1x8x32xf32, #tpu.memory_space<vmem>>, vector<1x8x32xf32>,
    return
  }
  func.func @transform_0(%arg0: i32) -> (i32, i32) {
    %c0_i32 = arith.constant 0 : i32
    %c0_i32_0 = arith.constant 0 : i32
    %c0_i32_1 = arith.constant 0 : i32
    return %c0_i32, %c0_i32_0 : i32, i32
  }
  func.func @transform_1(%arg0: i32) -> (i32, i32, i32) {
    %c0_i32 = arith.constant 0 : i32
    %c0_i32_0 = arith.constant 0 : i32
    %c0_i32_1 = arith.constant 0 : i32
    return %arg0, %c0_i32, %c0_i32_0 : i32, i32, i32
  }
  func.func @transform_2(%arg0: i32) -> (i32, i32) {
    %c0_i32 = arith.constant 0 : i32
    %c0_i32_0 = arith.constant 0 : i32
    %c0_i32_1 = arith.constant 0 : i32
    return %c0_i32, %c0_i32_0 : i32, i32
  }
  func.func @transform_3(%arg0: i32) -> (i32, i32) {
    %c0_i32 = arith.constant 0 : i32
    %c0_i32_0 = arith.constant 0 : i32
    %c0_i32_1 = arith.constant 0 : i32
    return %c0_i32, %c0_i32_0 : i32, i32
  }
  func.func @transform_4(%arg0: i32) -> (i32, i32) {
    %c0_i32 = arith.constant 0 : i32
    %c0_i32_0 = arith.constant 0 : i32
    %c0_i32_1 = arith.constant 0 : i32
    return %c0_i32, %c0_i32_0 : i32, i32
  }
  func.func @transform_5(%arg0: i32) -> (i32, i32) {
    %c0_i32 = arith.constant 0 : i32
    %c0_i32_0 = arith.constant 0 : i32
    %c0_i32_1 = arith.constant 0 : i32
    return %c0_i32, %c0_i32_0 : i32, i32
  }
  func.func @transform_6(%arg0: i32) -> (i32, i32) {
    %c0_i32 = arith.constant 0 : i32
    %c0_i32_0 = arith.constant 0 : i32
    %c0_i32_1 = arith.constant 0 : i32
    return %c0_i32, %c0_i32_0 : i32, i32
  }
  func.func @transform_7(%arg0: i32) -> (i32, i32) {
    %c0_i32 = arith.constant 0 : i32
    %c0_i32_0 = arith.constant 0 : i32
    %c0_i32_1 = arith.constant 0 : i32
    return %c0_i32, %c0_i32_0 : i32, i32
  }
  func.func @transform_8(%arg0: i32) -> (i32, i32) {
    %c0_i32 = arith.constant 0 : i32
    %c0_i32_0 = arith.constant 0 : i32
    %c0_i32_1 = arith.constant 0 : i32
    return %c0_i32, %c0_i32_0 : i32, i32
  }
  func.func @transform_9(%arg0: i32) -> (i32, i32, i32) {
    %c0_i32 = arith.constant 0 : i32
    %c0_i32_0 = arith.constant 0 : i32
    %c0_i32_1 = arith.constant 0 : i32
    return %arg0, %c0_i32, %c0_i32_0 : i32, i32, i32
  }
}

</mosaic_0001>

<bundles_post_ra>
// kernel: byte_transformer_forward.9
= control target key start
LH: loop header
LB: loop body
LE: loop exit
PB: predicated region body
PF: predicated region fallthrough
CT: control target
= control target key end

     0   :  { %s820_s0 = inlined_call_operand.<no memory space> [shape: f32[1,1], index: 0, kind: input, shape index: {}]   ;;  %s821_s1 = inlined_call_operand.vmem [shape: f32[2,8,32], index: 1, kind: input, shape index: {}]   ;;  %s822_s2 = inlined_call_operand.vmem [shape: f32[1,32], index: 2, kind: input, shape index: {}]   ;;  %s823_s3 = inlined_call_operand.vmem [shape: f32[1,32], index: 3, kind: input, shape index: {}]   ;;  %s824_s4 = inlined_call_operand.vmem [shape: f32[1,32], index: 4, kind: input, shape index: {}]   ;;  %s825_s5 = inlined_call_operand.vmem [shape: f32[32,64], index: 5, kind: input, shape index: {}]   ;;  %s826_s6 = inlined_call_operand.vmem [shape: f32[1,64], index: 6, kind: input, shape index: {}]   ;;  %s827_s7 = inlined_call_operand.hbm [shape: f32[2,8,64], index: 7, kind: output, shape index: {}]  }
   0x1   :  { %v12_v0 = vstv %s820_s0 }
   0x2   :  { %13 = vst [vmem:[#allocation2] sm:$0x1] %v12_v0 }
   0x3   :  { %14 = vsyncpa [#allocation4], 0 }
   0x4   :  { %16 = vsyncpa [#allocation4 + $0x1], 0  ;;  %s693_s26 = smov 0   ;;  %s695_s27 = smov 0  }
   0x5   :  { %s697_s28 = smov 0   ;;  %s699_s29 = smov 0  }
   0x6 LB: > { %s714_s0 = sadd.s32 4294967295, %s644_s29   ;;  %s493_s30 = sadd.s32 4294967294, %s644_s29   ;;  %s644_s29 = sphi %s699_s29, %s833_s29   ;;  %s640_s28 = sphi %s697_s28, %s832_s28   ;;  %s636_s27 = sphi %s695_s27, %s831_s27   ;;  %s632_s26 = sphi %s693_s26, %s830_s26  }
   0x7   : > { %s718_s8 = sadd.s32 1, %s644_s29   ;;  %s181_s9 = sadd.s32 1, %s640_s28 }
   0x8   : > { %s178_s10 = ssub.s32 %s644_s29, %s718_s8  ;;  %p191_p0 = scmp.ne.s32.totalorder %s640_s28, %s636_s27 }
   0x9   : > { %p179_p1 = scmp.eq.s32.totalorder %s178_s10, 0  ;;  %p192_p2 = scmp.eq.s32.totalorder %s714_s0, 1 }
   0xa   : > { %p197_p3 = scmp.ne.s32.totalorder %s636_s27, %s632_s26  ;;  %p198_p4 = scmp.eq.s32.totalorder %s493_s30, 1 }
   0xb   : > { %s729_s11 = scalar_select %p179_p1, %s640_s28, %s181_s9  }
   0xc   : > { %p731_p5 = por %p192_p2, %p191_p0  ;;  %p735_p6 = por %p198_p4, %p197_p3 }
   0xd   : > { %p496_p7 = scmp.ge.s32.totalorder %s644_s29, 1  ;;  %p241_p8 = scmp.lt.s32.totalorder %s644_s29, 3 }
   0xf   : > { %p242_p9 = pnand %p496_p7, %p241_p8 }
  0x10   : > { %p272_p10 = scmp.lt.s32.totalorder (!%p242_p9), %s714_s0, 1  ;;  %vm282_vm0 = vcmask (!%p242_p9), 261120   ;;  %v280_v8 = vld [vmem:[#allocation2] sm:$0x1] (!%p242_p9)  ;;  %v335_v10 = vld [vmem:[%s825_s5 + $0x8] sm:$0xff] (!%p242_p9)  ;;  %v646_v12 = vmov (!%p242_p9), 0.0|0.0  }
  0x11   : > { %245 = sbr.rel (%p242_p9) target bundleno = 608 (0x260), region = 48  ;;  %532 = vpush (!%p242_p9), %v280_v8  ;;  %v334_v9 = vld [vmem:[%s825_s5] sm:$0xff] (!%p242_p9)  ;;  %526 = vmatprep.subr.bf16.mxu0 (!%p242_p9), %v646_v12  ;;  %v336_v13 = vld [vmem:[%s825_s5 + $0x10] sm:$0xff] (!%p242_p9)  ;;  %v337_v14 = vld [vmem:[%s825_s5 + $0x18] sm:$0xff] (!%p242_p9)  ;;  %vm647_vm1 = vmmov (!%p242_p9), 0   ;;  %v648_v16 = vmov (!%p242_p9), 0.0  }
  0x12   : > { %v527_v11 = vpack.c.bf16 (!%p242_p9), %v335_v10, %v334_v9  ;;  %v530_v15 = vpack.c.bf16 (!%p242_p9), %v337_v14, %v336_v13  ;;  %523 = vmatprep.mubr.msk.f32.mxu0 (!%p242_p9), %vm647_vm1, %v648_v16  ;;  %v499_v21 = vld [vmem:[%s822_s2] ss:$0 sm:$0xff] (!%p242_p9)  ;;  %s269_s20 = sand.u32 (!%p242_p9), 1, %s636_s27   ;;  %s507_s24 = sshll.u32 (!%p242_p9), %s714_s0, 7  ;;  %vm418_vm2 = vcmask (!%p242_p9), 523264  }
  0x13   : > { %v500_v23 = vld [vmem:[%s823_s3] ss:$0 sm:$0xff] (!%p242_p9)  ;;  %s497_s21 = sshll.u32 (!%p242_p9), %s269_s20, 3 }
  0x14   : > { %528 = vmatpush3.bf16.msra.mxu0 (!%p242_p9), %v527_v11  ;;  %v501_v26 = vld [vmem:[%s824_s4] ss:$0 sm:$0xff] (!%p242_p9)  ;;  %s271_s25 = scalar_lea.vmem (!%p242_p9), [#allocation3], %s497_s21 }
  0x15   : > { %529 = vmatprep.subr.bf16.mxu0 (!%p242_p9), %v646_v12  ;;  %v504_v40 = vld [vmem:[%s826_s6] ss:$0 sm:$0xff] (!%p242_p9)  ;;  %s434_s30 = sshll.u32 (!%p242_p9), %s271_s25, 4  ;;  %s780_s30 = int_to_ptr.vmem [resolvable:$true] %s434_s30 }
  0x16   : > { %s582_s16 = scalar_lea.vmem (!%p242_p9), %s780_s30, 128 }
  0x17   : > { %p583_p11 = scmp.ne.s32.totalorder (!%p242_p9), %s780_s30, %s582_s16 }
  0x18   : > { %s273_s14 = scalar_select %p272_p10, %s714_s0, 1  ;;  %531 = vmatpush3.bf16.msra.mxu0 %v530_v15 }
  0x19   : > { %p584_p12 = pnand %p583_p11, %p731_p5  ;;  %s649_s0 = smov [#allocation3]  }
  0x1a   : > { %s498_s15 = sshll.u32 %s273_s14, 3  ;;  %s778_s14 = scalar_lea.hbm %s827_s7, %s507_s24 }
  0x1b   : > { %s275_s18 = scalar_lea.vmem %s821_s1, %s498_s15  ;;  %s421_s15 = scalar_lea.sflag [#allocation4], %s269_s20 }
  0x1c   : > { %v276_v1 = vld [vmem:[%s275_s18] sm:$0xff]  ;;  %p585_p13 = pneg %p584_p12  ;;  %s586_s17 = sshll.u32 %s649_s0, 4  ;;  %s587_s17 = int_to_ptr.vmem [resolvable:$false] %s586_s17 }
  0x1d   : > { %v283_v2 = vsel %vm282_vm0, %v276_v1, 0.0  ;;  %p589_p0 = scmp.lt.s32.totalorder %s780_s30, %s587_s17 }
  0x1e   : > { %284 = vadd.xlane.f32.xlu0 %v283_v2 }
  0x42   : > { %s533_s18 = spop %532 }
  0x43   : > { %s328_s19 = ssub.f32 1.0, %s533_s18  ;;  %v326_v36 = vstv %s533_s18  ;;  %s588_s18 = scalar_lea.vmem %s587_s17, 256 }
  0x44   : > { %p590_p1 = scmp.lt.s32.totalorder %s588_s18, %s582_s16 }
  0x45   : > { %v329_v32 = vstv %s328_s19 }
  0x46   : > { %v330_v35 = vmul.f32 %v329_v32, %v276_v1  ;;  %p591_p2 = por %p590_p1, %p589_p0 }
  0x48   : > { %p592_p3 = pnand %p591_p2, %p585_p13 }
  0xab   : > { %v285_v3 = vpop.xlane.xlu0 %284 }
  0xac   : > { %v287_v4 = vmul.f32 0.03125, %v285_v3 }
  0xae   : > { %v288_v5 = vsub.f32 %v276_v1, %v287_v4 }
  0xb0   : > { %v289_v6 = vmul.f32 %v288_v5, %v288_v5 }
  0xb2   : > { %v290_v7 = vsel %vm282_vm0, %v289_v6, 0.0 }
  0xb3   : > { %291 = vadd.xlane.f32.xlu0 %v290_v7 }
 0x140   : > { %v292_v17 = vpop.xlane.xlu0 %291 }
 0x141   : > { %v293_v18 = vmul.f32 0.03125, %v292_v17 }
 0x143   : > { %v294_v19 = vadd.f32 1e-05, %v293_v18 }
 0x145   : > { %576 = vrsqrt.f32 %v294_v19 }
 0x14f   : > { %v577_v20 = vpop.eup %576 }
 0x150   : > { %v296_v22 = vmul.f32 %v577_v20, %v288_v5 }
 0x152   : > { %v303_v24 = vmul.f32 %v499_v21, %v296_v22 }
 0x154   : > { %v310_v25 = vadd.f32 %v500_v23, %v303_v24 }
 0x156   : > { %v311_v27 = vand.u32 2147483647, %v310_v25 }
 0x158   : > { %v318_v28 = vsub.f32 %v311_v27, %v501_v26 }
 0x15a   : > { %v502_v29 = vmul.f32 -1.442695, %v318_v28 }
 0x15c   : > { %578 = vpow2.f32 %v502_v29 }
 0x166   : > { %v579_v30 = vpop.eup %578 }
 0x167   : > { %v322_v31 = vadd.f32 1.0, %v579_v30 }
 0x169   : > { %580 = vrcp.f32 %v322_v31 }
 0x173   : > { %v581_v33 = vpop.eup %580 }
 0x174   : > { %v325_v34 = vmul.f32 %v581_v33, %v276_v1 }
 0x176   : > { %v327_v37 = vmul.f32 %v326_v36, %v325_v34 }
 0x178   : > { %v331_v38 = vadd.f32 %v330_v35, %v327_v37 }
 0x17a   : > { %v503_v39 = vclamps-f32 %v331_v38, 100.0 }
 0x17c   : > { %524 = vmatmul.mubr.msk.f32.vlgmr.msra.gmra.mrb[0].mxu0 %vm282_vm0, %v503_v39 }
 0x24f   : > { %v414_v41 = vpop.f32.mrb[0].mxu0 }
 0x250   : > { %v415_v42 = vadd.f32 %v504_v40, %v414_v41  ;;  %v525_v43 = vpop.f32.mrb[1].mxu0 }
 0x252   : > { %419 = vst.msk [vmem:[%s271_s25] sm:$0xff] %vm418_vm2, %v415_v42 }
 0x253   : > { %595 = shalt.err (!%p592_p3)
}
 0x254   : > { %s596_s19 = scalar_lea.hbm %s778_s14, 128  ;;  %s600_s22 = scalar_lea.hbm %s827_s7, 256 }
 0x255   : > { %p597_p4 = scmp.ne.s32.totalorder %s778_s14, %s596_s19  ;;  %p601_p9 = scmp.lt.u32.totalorder %s778_s14, %s827_s7 }
 0x256   : > { %p602_p10 = scmp.lt.u32.totalorder %s600_s22, %s596_s19  ;;  %p604_p12 = scmp.lt.u32.totalorder %s596_s19, %s778_s14 }
 0x257   : > { %p598_p7 = pnand %p597_p4, %p731_p5 }
 0x258   : > { %p603_p11 = por %p602_p10, %p601_p9 }
 0x259   : > { %p599_p8 = pneg %p598_p7 }
 0x25a   : > { %p605_p13 = por %p604_p12, %p603_p11 }
 0x25c   : > { %p606_p0 = pnand %p605_p13, %p599_p8 }
 0x25e   : > { %609 = shalt.err (!%p606_p0)
}
 0x25f   : > { %534 = dma.vmem_to_hbm [thread:$0]  (%p731_p5), %s780_s30, 128, %s778_s14, %s421_s15  }
 0x260 PF: > { %p540_p1 = scmp.ge.s32.totalorder %s644_s29, 2  ;;  %s446_s25 = sand.u32 1, %s632_s26  }
 0x261   : > { %s447_s9 = scalar_lea.sflag [#allocation4], %s446_s25 }
 0x262   : > { %p537_p2 = pnand %p540_p1, %p735_p6 }
 0x264   : > { %627 = dma.done.wait (!%p537_p2), %s447_s9, 128  }
 0x265   : > { %629 = vsyncadd (!%p537_p2), %s447_s9, 4294967168  ;;  %p19_p3 = scmp.ge.s32.totalorder %s718_s8, 4   ;;  %s830_s26 = smov %s636_s27 }
 0x266   : > { %s831_s27 = smov %s640_s28  ;;  %s832_s28 = smov %s729_s11 }
 0x267   : > { %s833_s29 = smov %s718_s8  ;;  %21 = sbr.rel (!%p19_p3) target bundleno = 6 (0x6), region = 83 }
 0x26e   :  { %452 = vsyncpa [#allocation4], 1 }
 0x26f   :  { %454 = vsyncpa [#allocation4 + $0x1], 1 }

// kernel: byte_transformer_forward.6
= control target key start
LH: loop header
LB: loop body
LE: loop exit
PB: predicated region body
PF: predicated region fallthrough
CT: control target
= control target key end

     0   :  { %s1012_s21 = smov 0   ;;  %s1151_s0 = inlined_call_operand.vmem [shape: f32[1,2], index: 0, kind: input, shape index: {}]   ;;  %s1152_s1 = inlined_call_operand.vmem [shape: f32[2,8,32], index: 1, kind: input, shape index: {}]   ;;  %s1153_s2 = inlined_call_operand.vmem [shape: f32[32,128], index: 2, kind: input, shape index: {}]   ;;  %s1154_s3 = inlined_call_operand.vmem [shape: f32[1,128], index: 3, kind: input, shape index: {}]   ;;  %s1155_s4 = inlined_call_operand.vmem [shape: f32[1,128], index: 4, kind: input, shape index: {}]   ;;  %s1156_s5 = inlined_call_operand.vmem [shape: f32[1,128], index: 5, kind: input, shape index: {}]   ;;  %s1157_s6 = inlined_call_operand.vmem [shape: f32[1,128], index: 6, kind: input, shape index: {}]   ;;  %s1158_s7 = inlined_call_operand.vmem [shape: f32[128,32], index: 7, kind: input, shape index: {}]   ;;  %s1159_s8 = inlined_call_operand.vmem [shape: f32[1,32], index: 8, kind: input, shape index: {}]   ;;  %s1160_s9 = inlined_call_operand.vmem [shape: f32[1,32], index: 9, kind: input, shape index: {}]   ;;  %s1161_s10 = inlined_call_operand.vmem [shape: f32[1,32], index: 10, kind: input, shape index: {}]   ;;  %s1162_s11 = inlined_call_operand.vmem [shape: f32[1,32], index: 11, kind: input, shape index: {}]   ;;  %s1163_s12 = inlined_call_operand.vmem [shape: f32[2,8,32], index: 12, kind: output, shape index: {}]  }
   0x1 LB: > { %s783_s22 = sadd.s32 4294967295, %s941_s21   ;;  %p787_p0 = scmp.ge.s32.totalorder %s941_s21, 1  ;;  %s941_s21 = sphi %s1012_s21, %s22_s21  }
   0x2   : > { %p361_p1 = scmp.lt.s32.totalorder %s941_s21, 3 }
   0x4   : > { %p362_p2 = pnand %p787_p0, %p361_p1 }
   0x5   : > { %v410_v0 = vld [vmem:[%s1153_s2] sm:$0xff] (!%p362_p2)  ;;  %v411_v1 = vld [vmem:[%s1153_s2 + $0x8] sm:$0xff] (!%p362_p2)  ;;  %v412_v2 = vld [vmem:[%s1153_s2 + $0x10] sm:$0xff] (!%p362_p2)  ;;  %v943_v3 = vmov (!%p362_p2), 0.0|0.0   ;;  %vm944_vm0 = vmmov (!%p362_p2), 0   ;;  %v945_v6 = vmov (!%p362_p2), 0.0  }
   0x6   : > { %365 = sbr.rel (%p362_p2) target bundleno = 1196 (0x4ac), region = 68  ;;  %873 = vmatprep.subr.bf16.mxu0 (!%p362_p2), %v943_v3  ;;  %v874_v4 = vpack.c.bf16 (!%p362_p2), %v411_v1, %v410_v0  ;;  %v413_v5 = vld [vmem:[%s1153_s2 + $0x18] sm:$0xff] (!%p362_p2)  ;;  %835 = vmatprep.mubr.msk.f32.mxu0 (!%p362_p2), %vm944_vm0, %v945_v6  ;;  %p401_p3 = scmp.lt.s32.totalorder (!%p362_p2), %s783_s22, 1  ;;  %v1036_v7 = vld [vmem:[%s1151_s0] sm:$0x1] (!%p362_p2)  ;;  %vm421_vm1 = vcmask (!%p362_p2), 261120  }
   0x7   : > { %903 = vpush (!%p362_p2), %v1036_v7  ;;  %879 = vmatprep.subr.bf16.mxu1 (!%p362_p2), %v943_v3  ;;  %870 = vmatprep.mubr.msk.f32.mxu1 (!%p362_p2), %vm944_vm0, %v945_v6  ;;  %v877_v8 = vpack.c.bf16 (!%p362_p2), %v413_v5, %v412_v2  ;;  %v790_v10 = vld [vmem:[%s1154_s3] ss:$0 sm:$0xff] (!%p362_p2)  ;;  %v577_v19 = vld [vmem:[%s1158_s7 + $0x8] sm:$0xff] (!%p362_p2)  ;;  %v578_v20 = vld [vmem:[%s1158_s7 + $0x10] sm:$0xff] (!%p362_p2)  ;;  %s946_s25 = smov (!%p362_p2), 127  }
   0x8   : > { %875 = vmatpush3.bf16.msra.mxu0 (!%p362_p2), %v874_v4  ;;  %v576_v18 = vld [vmem:[%s1158_s7] sm:$0xff] (!%p362_p2)  ;;  %v579_v22 = vld [vmem:[%s1158_s7 + $0x18] sm:$0xff] (!%p362_p2)  ;;  %v581_v25 = vld [vmem:[%s1158_s7 + $0x28] sm:$0xff] (!%p362_p2) }
   0x9   : > { %876 = vmatprep.subr.bf16.mxu0 (!%p362_p2), %v943_v3  ;;  %v880_v21 = vpack.c.bf16 (!%p362_p2), %v577_v19, %v576_v18  ;;  %v883_v23 = vpack.c.bf16 (!%p362_p2), %v579_v22, %v578_v20  ;;  %v580_v24 = vld [vmem:[%s1158_s7 + $0x20] sm:$0xff] (!%p362_p2)  ;;  %v582_v27 = vld [vmem:[%s1158_s7 + $0x30] sm:$0xff] (!%p362_p2)  ;;  %v583_v28 = vld [vmem:[%s1158_s7 + $0x38] sm:$0xff] (!%p362_p2) }
   0xa   : > { %v886_v26 = vpack.c.bf16 (!%p362_p2), %v581_v25, %v580_v24  ;;  %v889_v29 = vpack.c.bf16 (!%p362_p2), %v583_v28, %v582_v27  ;;  %v584_v30 = vld [vmem:[%s1158_s7 + $0x40] sm:$0xff] (!%p362_p2)  ;;  %v585_v31 = vld [vmem:[%s1158_s7 + $0x48] sm:$0xff] (!%p362_p2)  ;;  %v586_v33 = vld [vmem:[%s1158_s7 + $0x50] sm:$0xff] (!%p362_p2) }
   0xb   : > { %881 = vmatpush3.bf16.msra.mxu1 (!%p362_p2), %v880_v21  ;;  %v892_v32 = vpack.c.bf16 (!%p362_p2), %v585_v31, %v584_v30  ;;  %v587_v34 = vld [vmem:[%s1158_s7 + $0x58] sm:$0xff] (!%p362_p2)  ;;  %v588_v36 = vld [vmem:[%s1158_s7 + $0x60] sm:$0xff] (!%p362_p2)  ;;  %v589_v37 = vld [vmem:[%s1158_s7 + $0x68] sm:$0xff] (!%p362_p2) }
   0xc   : > { %878 = vmatpush3.bf16.msra.mxu0 (!%p362_p2), %v877_v8  ;;  %882 = vmatprep.subr.bf16.mxu1 (!%p362_p2), %v943_v3  ;;  %v895_v35 = vpack.c.bf16 (!%p362_p2), %v587_v34, %v586_v33  ;;  %v898_v38 = vpack.c.bf16 (!%p362_p2), %v589_v37, %v588_v36  ;;  %v590_v39 = vld [vmem:[%s1158_s7 + $0x70] sm:$0xff] (!%p362_p2)  ;;  %v591_v40 = vld [vmem:[%s1158_s7 + $0x78] sm:$0xff] (!%p362_p2)  ;;  %v792_v46 = vld [vmem:[%s1155_s4] ss:$0 sm:$0xff] (!%p362_p2) }
   0xd   : > { %s1165_s22 = smov (!%p401_p3, %s783_s22), 1  ;;  %v901_v41 = vpack.c.bf16 %v591_v40, %v590_v39  ;;  %v793_v48 = vld [vmem:[%s1156_s5] ss:$0 sm:$0xff] }
   0xe   : > { %s788_s15 = sshll.u32 %s1165_s22, 3  ;;  %v794_v51 = vld [vmem:[%s1157_s6] ss:$0 sm:$0xff] }
   0xf   : > { %s404_s18 = scalar_lea.vmem %s1152_s1, %s788_s15  ;;  %884 = vmatpush3.bf16.msra.mxu1 %v883_v23  ;;  %v797_v28 = vld [vmem:[%s1159_s8] ss:$0 sm:$0xff]  ;;  %s408_s13 = scalar_lea.vmem %s1163_s12, %s788_s15 }
  0x10   : > { %v1049_v9 = vld [vmem:[%s404_s18] sm:$0xff]  ;;  %885 = vmatprep.subr.bf16.mxu1 %v943_v3 }
  0x11   : > { %836 = vmatmul.mubr.msk.f32.vlgmr.msra.gmra.mrb[0].mxu0 %vm421_vm1, %v1049_v9 }
  0x13   : > { %887 = vmatpush3.bf16.msra.mxu1 %v886_v26 }
  0x14   : > { %888 = vmatprep.subr.bf16.mxu1 %v943_v3 }
  0x17   : > { %890 = vmatpush3.bf16.msra.mxu1 %v889_v29 }
  0x18   : > { %891 = vmatprep.subr.bf16.mxu1 %v943_v3 }
  0x1b   : > { %893 = vmatpush3.bf16.msra.mxu1 %v892_v32 }
  0x1c   : > { %894 = vmatprep.subr.bf16.mxu1 %v943_v3 }
  0x1f   : > { %896 = vmatpush3.bf16.msra.mxu1 %v895_v35 }
  0x20   : > { %897 = vmatprep.subr.bf16.mxu1 %v943_v3 }
  0x23   : > { %899 = vmatpush3.bf16.msra.mxu1 %v898_v38 }
  0x24   : > { %900 = vmatprep.subr.bf16.mxu1 %v943_v3 }
  0x27   : > { %902 = vmatpush3.bf16.msra.mxu1 %v901_v41 }
  0x38   : > { %s904_s14 = spop %903 }
  0x39   : > { %s543_s16 = ssub.f32 1.0, %s904_s14  ;;  %v541_v60 = vstv %s904_s14 }
  0x3b   : > { %v544_v58 = vstv %s543_s16 }
  0xe4   : > { %v491_v11 = vpop.f32.mrb[0].mxu0 }
  0xe5   : > { %v1056_v12 = vadd.f32 %v790_v10, %v491_v11  ;;  %v837_v13 = vpop.f32.mrb[1].mxu0 }
  0xe7   : > { %500 = vadd.xlane.f32.xlu0 %v1056_v12  ;;  %v545_v61 = vmul.f32 %v544_v58, %v1056_v12 }
 0x174   : > { %v501_v14 = vpop.xlane.xlu0 %500 }
 0x175   : > { %v503_v15 = vmul.f32 0.0078125, %v501_v14 }
 0x177   : > { %v504_v16 = vsub.f32 %v1056_v12, %v503_v15 }
 0x179   : > { %v505_v17 = vmul.f32 %v504_v16, %v504_v16 }
 0x17b   : > { %506 = vadd.xlane.f32.xlu0 %v505_v17 }
 0x191   : > { %673 = vrot.lane.b32.xlu0 %v1036_v7, %s946_s25 }
 0x208   : > { %v507_v42 = vpop.xlane.xlu0 %506 }
 0x209   : > { %v508_v43 = vmul.f32 0.0078125, %v507_v42  ;;  %v798_v42 = vld [vmem:[%s1160_s9] ss:$0 sm:$0xff] }
 0x20b   : > { %v509_v44 = vadd.f32 1e-05, %v508_v43 }
 0x20c   : > { %v674_v19 = vpop.permute.xlu0 %673 }
 0x20d   : > { %919 = vrsqrt.f32 %v509_v44  ;;  %905 = vpush %v674_v19  ;;  %v799_v44 = vld [vmem:[%s1161_s10] ss:$0 sm:$0xff] }
 0x217   : > { %v920_v45 = vpop.eup %919 }
 0x218   : > { %v511_v47 = vmul.f32 %v920_v45, %v504_v16 }
 0x21a   : > { %v518_v49 = vmul.f32 %v792_v46, %v511_v47  ;;  %v800_v47 = vld [vmem:[%s1162_s11] ss:$0 sm:$0xff] }
 0x21c   : > { %v525_v50 = vadd.f32 %v793_v48, %v518_v49 }
 0x21e   : > { %v526_v52 = vand.u32 2147483647, %v525_v50 }
 0x220   : > { %v533_v53 = vsub.f32 %v526_v52, %v794_v51 }
 0x222   : > { %v795_v54 = vmul.f32 -1.442695, %v533_v53 }
 0x224   : > { %921 = vpow2.f32 %v795_v54 }
 0x22e   : > { %v922_v55 = vpop.eup %921 }
 0x22f   : > { %v537_v56 = vadd.f32 1.0, %v922_v55 }
 0x231   : > { %923 = vrcp.f32 %v537_v56 }
 0x23b   : > { %v924_v57 = vpop.eup %923 }
 0x23c   : > { %v540_v59 = vmul.f32 %v924_v57, %v1056_v12 }
 0x23e   : > { %v542_v62 = vmul.f32 %v541_v60, %v540_v59  ;;  %s906_s27 = spop %905 }
 0x23f   : > { %s722_s28 = ssub.f32 1.0, %s906_s27  ;;  %v720_v56 = vstv %s906_s27 }
 0x240   : > { %v546_v63 = vadd.f32 %v545_v61, %v542_v62 }
 0x241   : > { %v723_v54 = vstv %s722_s28 }
 0x242   : > { %v796_v0 = vclamps-f32 %v546_v63, 100.0 }
 0x244   : > { %v550_v1 = vmul.f32 0.70710677, %v796_v0  ;;  %v549_v25 = vmul.f32 0.5, %v796_v0 }
 0x246   : > { %v551_v2 = vand.u32 2147483647, %v550_v1  ;;  %vm571_vm2 = vcmp.lt.f32.partialorder %v550_v1, 0.0 }
 0x248   : > { %v552_v3 = vmul.f32 0.3275911, %v551_v2  ;;  %v565_v5 = vsub.f32 0.0, %v551_v2 }
 0x24a   : > { %v553_v4 = vadd.f32 1.0, %v552_v3  ;;  %v566_v7 = vmul.f32 %v565_v5, %v551_v2 }
 0x24c   : > { %925 = vrcp.f32 %v553_v4  ;;  %v567_v11 = vmul.f32 1.442695, %v566_v7 }
 0x24e   : > { %927 = vpow2.f32 %v567_v11 }
 0x256   : > { %v926_v6 = vpop.eup %925 }
 0x257   : > { %v556_v8 = vmul.f32 1.0614054, %v926_v6 }
 0x258   : > { %v928_v20 = vpop.eup %927 }
 0x259   : > { %v557_v10 = vadd.f32 -1.4531521, %v556_v8 }
 0x25b   : > { %v558_v13 = vmul.f32 %v926_v6, %v557_v10 }
 0x25d   : > { %v559_v14 = vadd.f32 1.4214138, %v558_v13 }
 0x25f   : > { %v560_v15 = vmul.f32 %v926_v6, %v559_v14 }
 0x261   : > { %v561_v16 = vadd.f32 -0.28449672, %v560_v15 }
 0x263   : > { %v562_v12 = vmul.f32 %v926_v6, %v561_v16 }
 0x265   : > { %v563_v17 = vadd.f32 0.2548296, %v562_v12 }
 0x267   : > { %v564_v18 = vmul.f32 %v926_v6, %v563_v17 }
 0x269   : > { %v569_v21 = vmul.f32 %v928_v20, %v564_v18 }
 0x26b   : > { %v570_v22 = vsub.f32 1.0, %v569_v21 }
 0x26d   : > { %v572_v23 = vsub.f32 0.0, %v570_v22 }
 0x26f   : > { %v573_v24 = vsel %vm571_vm2, %v572_v23, %v570_v22 }
 0x270   : > { %v574_v26 = vadd.f32 1.0, %v573_v24 }
 0x272   : > { %v575_v27 = vmul.f32 %v574_v26, %v549_v25 }
 0x274   : > { %871 = vmatmul.mubr.f32.vlgmr.msra.gmra.mrb[0].mxu1 %v575_v27 }
 0x347   : > { %v665_v29 = vpop.f32.mrb[0].mxu1 }
 0x348   : > { %v666_v30 = vadd.f32 %v797_v28, %v665_v29  ;;  %v872_v31 = vpop.f32.mrb[1].mxu1 }
 0x34a   : > { %v677_v32 = vsel %vm421_vm1, %v666_v30, 0.0  ;;  %v724_v57 = vmul.f32 %v723_v54, %v666_v30 }
 0x34b   : > { %678 = vadd.xlane.f32.xlu1 %v677_v32 }
 0x3d8   : > { %v679_v33 = vpop.xlane.xlu1 %678 }
 0x3d9   : > { %v681_v34 = vmul.f32 0.03125, %v679_v33 }
 0x3db   : > { %v682_v35 = vsub.f32 %v666_v30, %v681_v34 }
 0x3dd   : > { %v683_v36 = vmul.f32 %v682_v35, %v682_v35 }
 0x3df   : > { %v684_v37 = vsel %vm421_vm1, %v683_v36, 0.0 }
 0x3e0   : > { %685 = vadd.xlane.f32.xlu1 %v684_v37 }
 0x46d   : > { %v686_v38 = vpop.xlane.xlu1 %685 }
 0x46e   : > { %v687_v39 = vmul.f32 0.03125, %v686_v38 }
 0x470   : > { %v688_v40 = vadd.f32 1e-05, %v687_v39 }
 0x472   : > { %929 = vrsqrt.f32 %v688_v40 }
 0x47c   : > { %v930_v41 = vpop.eup %929 }
 0x47d   : > { %v690_v43 = vmul.f32 %v930_v41, %v682_v35 }
 0x47f   : > { %v697_v45 = vmul.f32 %v798_v42, %v690_v43 }
 0x481   : > { %v704_v46 = vadd.f32 %v799_v44, %v697_v45 }
 0x483   : > { %v705_v48 = vand.u32 2147483647, %v704_v46 }
 0x485   : > { %v712_v49 = vsub.f32 %v705_v48, %v800_v47 }
 0x487   : > { %v801_v50 = vmul.f32 -1.442695, %v712_v49 }
 0x489   : > { %931 = vpow2.f32 %v801_v50 }
 0x493   : > { %v932_v51 = vpop.eup %931 }
 0x494   : > { %v716_v52 = vadd.f32 1.0, %v932_v51 }
 0x496   : > { %933 = vrcp.f32 %v716_v52 }
 0x4a0   : > { %v934_v53 = vpop.eup %933 }
 0x4a1   : > { %v719_v55 = vmul.f32 %v934_v53, %v666_v30 }
 0x4a3   : > { %v721_v58 = vmul.f32 %v720_v56, %v719_v55 }
 0x4a5   : > { %v725_v59 = vadd.f32 %v724_v57, %v721_v58 }
 0x4a7   : > { %v802_v60 = vclamps-f32 %v725_v59, 100.0 }
 0x4a9   : > { %v728_v61 = vadd.f32 %v802_v60, %v1049_v9 }
 0x4ab   : > { %729 = vst.msk [vmem:[%s408_s13] sm:$0xff] %vm421_vm1, %v728_v61 }
 0x4ac PF: > { %s22_s21 = sadd.s32 1, %s941_s21  }
 0x4ad   : > { %p19_p4 = scmp.ge.s32.totalorder %s22_s21, 4  }
 0x4af   :  { %21 = sbr.rel (!%p19_p4) target bundleno = 1 (0x1), region = 98 }

// kernel: byte_transformer_forward.5
= control target key start
LH: loop header
LB: loop body
LE: loop exit
PB: predicated region body
PF: predicated region fallthrough
CT: control target
= control target key end

     0   :  { %s1822_s30 = smov 0   ;;  %s2015_s0 = inlined_call_operand.vmem [shape: f32[1,6], index: 0, kind: input, shape index: {}]   ;;  %s2016_s1 = inlined_call_operand.vmem [shape: f32[2,8,32], index: 1, kind: input, shape index: {}]   ;;  %s2017_s2 = inlined_call_operand.vmem [shape: f32[32,96], index: 2, kind: input, shape index: {}]   ;;  %s2018_s3 = inlined_call_operand.vmem [shape: f32[1,96], index: 3, kind: input, shape index: {}]   ;;  %s2019_s4 = inlined_call_operand.vmem [shape: f32[32,32], index: 4, kind: input, shape index: {}]   ;;  %s2020_s5 = inlined_call_operand.vmem [shape: f32[1,32], index: 5, kind: input, shape index: {}]   ;;  %s2021_s6 = inlined_call_operand.vmem [shape: f32[1,32], index: 6, kind: input, shape index: {}]   ;;  %s2022_s7 = inlined_call_operand.vmem [shape: f32[1,32], index: 7, kind: input, shape index: {}]   ;;  %s2023_s8 = inlined_call_operand.vmem [shape: f32[1,32], index: 8, kind: input, shape index: {}]   ;;  %s2024_s9 = inlined_call_operand.vmem [shape: f32[2,8,32], index: 9, kind: output, shape index: {}]  }
   0x1 LB: > { %s1543_s10 = sadd.s32 4294967295, %s1750_s30   ;;  %p1547_p0 = scmp.ge.s32.totalorder %s1750_s30, 1  ;;  %s1750_s30 = sphi %s1822_s30, %s19_s30  }
   0x2   : > { %p286_p1 = scmp.lt.s32.totalorder %s1750_s30, 3 }
   0x4   : > { %p287_p2 = pnand %p1547_p0, %p286_p1 }
   0x5   : > { %v329_v0 = vld [vmem:[%s2017_s2] sm:$0xff] (!%p287_p2)  ;;  %v330_v1 = vld [vmem:[%s2017_s2 + $0x8] sm:$0xff] (!%p287_p2)  ;;  %v331_v2 = vld [vmem:[%s2017_s2 + $0x10] sm:$0xff] (!%p287_p2)  ;;  %v1752_v3 = vmov (!%p287_p2), 0.0|0.0   ;;  %vm1753_vm0 = vmmov (!%p287_p2), 0   ;;  %v1754_v6 = vmov (!%p287_p2), 0.0   ;;  %v420_v19 = vlaneseq (!%p287_p2) }
   0x6   : > { %290 = sbr.rel (%p287_p2) target bundleno = 2955 (0xb8b), region = 56  ;;  %1676 = vmatprep.subr.bf16.mxu0 (!%p287_p2), %v1752_v3  ;;  %v1677_v4 = vpack.c.bf16 (!%p287_p2), %v330_v1, %v329_v0  ;;  %v332_v5 = vld [vmem:[%s2017_s2 + $0x18] sm:$0xff] (!%p287_p2)  ;;  %1613 = vmatprep.mubr.msk.f32.mxu0 (!%p287_p2), %vm1753_vm0, %v1754_v6  ;;  %p320_p3 = scmp.lt.s32.totalorder (!%p287_p2), %s1543_s10, 1  ;;  %vm340_vm1 = vcmask (!%p287_p2), 261120   ;;  %v1865_v9 = vld [vmem:[%s2015_s0] sm:$0x1] (!%p287_p2) }
   0x7   : > { %1616 = vmatprep.subr.mxu1 (!%p287_p2), %v1754_v6  ;;  %1618 = vmatprep.mubr.msk.f32.mxu1 (!%p287_p2), %vm1753_vm0, %v1754_v6  ;;  %v1680_v7 = vpack.c.bf16 (!%p287_p2), %v332_v5, %v331_v2  ;;  %v1550_v10 = vld [vmem:[%s2018_s3] ss:$0 sm:$0xff] (!%p287_p2)  ;;  %1682 = vpush (!%p287_p2), %v1865_v9  ;;  %s1755_s27 = smov (!%p287_p2), 120   ;;  %s1756_s28 = smov (!%p287_p2), 96   ;;  %vm428_vm2 = vcmask (!%p287_p2), 64512   ;;  %v421_v20 = vshrl.u32 (!%p287_p2), %v420_v19, 7 }
   0x8   : > { %1678 = vmatpush3.bf16.msra.mxu0 (!%p287_p2), %v1677_v4  ;;  %s1757_s29 = smov (!%p287_p2), 88   ;;  %s1758_s11 = smov (!%p287_p2), 126   ;;  %v423_v21 = vand.u32 (!%p287_p2), 127, %v420_v19  ;;  %vm1760_vm4 = vmmov (!%p287_p2), 1   ;;  %v415_v49 = vld [vmem:[%s2019_s4 + $0x8] sm:$0xff] (!%p287_p2)  ;;  %v414_v58 = vld [vmem:[%s2019_s4] sm:$0xff] (!%p287_p2) }
   0x9   : > { %1679 = vmatprep.subr.bf16.mxu0 (!%p287_p2), %v1752_v3  ;;  %s1759_s12 = smov (!%p287_p2), 125   ;;  %s1761_s16 = smov (!%p287_p2), 56   ;;  %v417_v28 = vld [vmem:[%s2019_s4 + $0x18] sm:$0xff] (!%p287_p2) }
   0xa   : > { %vm1891_vm3 = vcmp.gt.s32.totalorder (!%p287_p2), %v423_v21, %v421_v20  ;;  %s1762_s17 = smov (!%p287_p2), 64   ;;  %s1763_s18 = smov (!%p287_p2), 80  }
   0xb   : > { %vm1898_vm5 = vmxor (!%p287_p2), %vm1891_vm3, %vm1760_vm4  ;;  %s1764_s20 = smov (!%p287_p2), 112   ;;  %s1765_s25 = smov (!%p287_p2), 124  }
   0xc   : > { %1681 = vmatpush3.bf16.msra.mxu0 (!%p287_p2), %v1680_v7  ;;  %s1771_s21 = smov (!%p287_p2), 127  }
   0xd   : > { %s2030_s10 = smov (!%p320_p3, %s1543_s10), 1  ;;  %1626 = vmatprep.subr.mxu0 %v1754_v6 }
   0xe   : > { %s1548_s19 = sshll.u32 %s2030_s10, 3 }
   0xf   : > { %s323_s22 = scalar_lea.vmem %s2016_s1, %s1548_s19 }
  0x10   : > { %v1855_v8 = vld [vmem:[%s323_s22] sm:$0xff] }
  0x11   : > { %1614 = vmatmul.mubr.msk.f32.vlgmr.msra.gmra.mrb[0].mxu0 %vm340_vm1, %v1855_v8 }
  0x12   : > { %1628 = vmatprep.mubr.msk.f32.mxu0 %vm1753_vm0, %v1754_v6 }
  0x38   : > { %s1683_s13 = spop %1682 }
  0x39   : > { %v1889_v22 = vstv %s1683_s13  ;;  %s327_s13 = scalar_lea.vmem %s2024_s9, %s1548_s19 }
  0xe4   : > { %v410_v11 = vpop.f32.mrb[0].mxu0 }
  0xe5   : > { %v1871_v12 = vadd.f32 %v1550_v10, %v410_v11  ;;  %v1615_v13 = vpop.f32.mrb[1].mxu0 }
  0xe7   : > { %603 = vrot.lane.b32.xlu1 %v1871_v12, %s1755_s27  ;;  %426 = vrot.lane.b32.xlu0 %v1871_v12, %s1756_s28  ;;  %s1766_s27 = smov 48   ;;  %s1767_s28 = smov 104  }
  0xeb   : > { %605 = vrot.lane.b32.xlu0 %v1871_v12, %s1757_s29  ;;  %508 = vrot.lane.b32.xlu1 %v1865_v9, %s1758_s11  ;;  %s1768_s29 = smov 72   ;;  %s1769_s11 = smov 123  }
  0xef   : > { %683 = vrot.lane.b32.xlu0 %v1865_v9, %s1759_s12 }
 0x159   : > { %v604_v14 = vpop.permute.xlu1 %603  ;;  %v427_v15 = vpop.permute.xlu0 %426 }
 0x15a   : > { %1617 = vmatpush3.xpose.msk.msra.mxu1 %vm428_vm2, %v427_v15 }
 0x15b   : > { %1621 = vmatprep.subr.mxu1 %v1754_v6 }
 0x15d   : > { %1619 = vmatmul.mubr.msk.f32.vlgmr.msra.gmra.mrb[0].mxu1 %vm428_vm2, %v1871_v12  ;;  %v606_v16 = vpop.permute.xlu0 %605  ;;  %v509_v17 = vpop.permute.xlu1 %508 }
 0x15e   : > { %1627 = vmatpush3.xpose.msk.msra.mxu0 %vm428_vm2, %v606_v16  ;;  %1684 = vpush %v509_v17  ;;  %1623 = vmatprep.mubr.msk.f32.mxu1 %vm1753_vm0, %v1754_v6 }
 0x15f   : > { %1636 = vmatprep.subr.mxu0 %v1754_v6 }
 0x161   : > { %1629 = vmatmul.mubr.msk.f32.vlgmr.msra.gmra.mrb[2].mxu0 %vm428_vm2, %v604_v14  ;;  %v684_v18 = vpop.permute.xlu0 %683 }
 0x162   : > { %1686 = vpush %v684_v18  ;;  %1638 = vmatprep.mubr.msk.f32.mxu0 %vm1753_vm0, %v1754_v6  ;;  %1637 = vmatpush3.msra.mxu0 %v415_v49 }
 0x163   : > { %1646 = vmatprep.subr.mxu0 %v1754_v6 }
 0x18f   : > { %s1685_s14 = spop %1684 }
 0x190   : > { %v512_v27 = vstv %s1685_s14 }
 0x193   : > { %s1687_s15 = spop %1686 }
 0x194   : > { %v687_v33 = vstv %s1687_s15  ;;  %s1770_s15 = smov 40  }
 0x230   : > { %v499_v24 = vpop.f32.mrb[0].mxu1 }
 0x231   : > { %v504_v25 = vmul.f32 %v1889_v22, %v499_v24  ;;  %v1620_v26 = vpop.f32.mrb[1].mxu1 }
 0x233   : > { %v505_v29 = vsel %vm1891_vm3, -inf, %v504_v25 }
 0x234   : > { %vm513_vm6 = vcmp.lt.f32.partialorder %v505_v29, %v512_v27  ;;  %v677_v30 = vpop.f32.mrb[2].mxu0 }
 0x235   : > { %v681_v31 = vmul.f32 %v677_v30, %v1889_v22  ;;  %v1630_v32 = vpop.f32.mrb[3].mxu0  ;;  %vm514_vm7 = vmand %vm1898_vm5, %vm513_vm6 }
 0x236   : > { %v515_v34 = vsel %vm514_vm7, -10000.0, %v505_v29 }
 0x237   : > { %v682_v35 = vsel %vm1891_vm3, -inf, %v681_v31  ;;  %v516_v36 = vsel %vm428_vm2, %v515_v34, -inf }
 0x238   : > { %vm688_vm8 = vcmp.lt.f32.partialorder %v682_v35, %v687_v33  ;;  %517 = vmax.xlane.f32.xlu1 %v516_v36  ;;  %v416_v33 = vld [vmem:[%s2019_s4 + $0x10] sm:$0xff] }
 0x239   : > { %vm689_vm9 = vmand %vm1898_vm5, %vm688_vm8 }
 0x23a   : > { %v690_v37 = vsel %vm689_vm9, -10000.0, %v682_v35 }
 0x23b   : > { %v691_v38 = vsel %vm428_vm2, %v690_v37, -inf }
 0x23c   : > { %692 = vmax.xlane.f32.xlu0 %v691_v38 }
 0x2c5   : > { %v518_v39 = vpop.xlane.xlu1 %517 }
 0x2c6   : > { %v519_v40 = vsub.f32 %v515_v34, %v518_v39 }
 0x2c8   : > { %v520_v41 = vmul.f32 1.442695, %v519_v40 }
 0x2c9   : > { %v693_v42 = vpop.xlane.xlu0 %692 }
 0x2ca   : > { %1722 = vpow2.f32 %v520_v41  ;;  %v694_v43 = vsub.f32 %v690_v37, %v693_v42 }
 0x2cc   : > { %v695_v44 = vmul.f32 1.442695, %v694_v43 }
 0x2ce   : > { %1724 = vpow2.f32 %v695_v44 }
 0x2d4   : > { %v1723_v45 = vpop.eup %1722 }
 0x2d5   : > { %v522_v46 = vsel %vm428_vm2, %v1723_v45, 0.0 }
 0x2d6   : > { %523 = vadd.xlane.f32.xlu0 %v522_v46 }
 0x2d8   : > { %v1725_v47 = vpop.eup %1724 }
 0x2d9   : > { %v697_v48 = vsel %vm428_vm2, %v1725_v47, 0.0 }
 0x2da   : > { %698 = vadd.xlane.f32.xlu1 %v697_v48 }
 0x2eb   : > { %702 = vrot.lane.b32.xlu1 %v1871_v12, %s1761_s16 }
 0x2ec   : > { %527 = vrot.lane.b32.xlu0 %v1871_v12, %s1762_s17 }
 0x2ef   : > { %926 = vrot.lane.b32.xlu1 %v1871_v12, %s1763_s18 }
 0x2f0   : > { %924 = vrot.lane.b32.xlu0 %v1871_v12, %s1764_s20 }
 0x2f3   : > { %1004 = vrot.lane.b32.xlu1 %v1865_v9, %s1765_s25 }
 0x363   : > { %v524_v50 = vpop.xlane.xlu0 %523 }
 0x364   : > { %1726 = vrcp.f32 %v524_v50 }
 0x367   : > { %v699_v51 = vpop.xlane.xlu1 %698  ;;  %v528_v52 = vpop.permute.xlu0 %527 }
 0x368   : > { %1728 = vrcp.f32 %v699_v51  ;;  %1622 = vmatpush3.msra.mxu1 %v528_v52 }
 0x369   : > { %1631 = vmatprep.subr.mxu1 %v1754_v6 }
 0x36b   : > { %v703_v55 = vpop.permute.xlu1 %702  ;;  %v925_v1 = vpop.permute.xlu0 %924 }
 0x36e   : > { %v1727_v53 = vpop.eup %1726 }
 0x36f   : > { %v526_v54 = vmul.f32 %v1727_v53, %v1723_v45  ;;  %v927_v59 = vpop.permute.xlu1 %926 }
 0x371   : > { %1624 = vmatmul.mubr.msk.f32.vlgmr.msra.gmra.mrb[2].mxu1 %vm428_vm2, %v526_v54  ;;  %v1568_v54 = vld [vmem:[%s2020_s5] ss:$0 sm:$0xff] }
 0x372   : > { %v1729_v56 = vpop.eup %1728  ;;  %1632 = vmatpush3.msra.mxu1 %v703_v55  ;;  %1633 = vmatprep.mubr.msk.f32.mxu1 %vm1753_vm0, %v1754_v6 }
 0x373   : > { %v701_v57 = vmul.f32 %v1729_v56, %v1725_v47  ;;  %1641 = vmatprep.subr.mxu1 %v1754_v6  ;;  %v1005_v60 = vpop.permute.xlu1 %1004 }
 0x374   : > { %1688 = vpush %v1005_v60 }
 0x375   : > { %1634 = vmatmul.mubr.msk.f32.vlgmr.msra.gmra.mrb[4].mxu1 %vm428_vm2, %v701_v57 }
 0x376   : > { %1643 = vmatprep.mubr.msk.f32.mxu1 %vm1753_vm0, %v1754_v6  ;;  %1642 = vmatpush3.msra.mxu1 %v414_v58 }
 0x377   : > { %1651 = vmatprep.subr.mxu1 %v1754_v6 }
 0x3a5   : > { %s1689_s26 = spop %1688 }
 0x3a6   : > { %v1008_v14 = vstv %s1689_s26 }
 0x444   : > { %v599_v61 = vpop.f32.mrb[2].mxu1 }
 0x445   : > { %v1625_v62 = vpop.f32.mrb[3].mxu1  ;;  %1644 = vmatmul.mubr.msk.f32.vlgmr.msra.gmra.mrb[6].mxu1 %vm428_vm2, %v599_v61 }
 0x446   : > { %1653 = vmatprep.mubr.msk.f32.mxu1 %vm1753_vm0, %v1754_v6 }
 0x448   : > { %v774_v63 = vpop.f32.mrb[4].mxu1 }
 0x449   : > { %v1635_v0 = vpop.f32.mrb[5].mxu1  ;;  %1639 = vmatmul.mubr.msk.f32.vlgmr.msra.gmra.mrb[4].mxu0 %vm428_vm2, %v774_v63 }
 0x44a   : > { %1647 = vmatpush3.xpose.msk.msra.mxu0 %vm428_vm2, %v927_v59  ;;  %1648 = vmatprep.mubr.msk.f32.mxu0 %vm1753_vm0, %v1754_v6 }
 0x44b   : > { %1656 = vmatprep.subr.mxu0 %v1754_v6 }
 0x44d   : > { %1649 = vmatmul.mubr.msk.f32.vlgmr.msra.gmra.mrb[6].mxu0 %vm428_vm2, %v925_v1 }
 0x44e   : > { %1658 = vmatprep.mubr.msk.f32.mxu0 %vm1753_vm0, %v1754_v6  ;;  %1657 = vmatpush3.msra.mxu0 %v416_v33 }
 0x44f   : > { %1666 = vmatprep.subr.mxu0 %v1754_v6 }
 0x518   : > { %v920_v2 = vpop.f32.mrb[6].mxu1 }
 0x519   : > { %v1645_v3 = vpop.f32.mrb[7].mxu1 }
 0x51c   : > { %v847_v4 = vpop.f32.mrb[4].mxu0 }
 0x51d   : > { %v1947_v5 = vadd.f32 %v920_v2, %v847_v4  ;;  %v1640_v7 = vpop.f32.mrb[5].mxu0 }
 0x520   : > { %v998_v10 = vpop.f32.mrb[6].mxu0 }
 0x521   : > { %v1002_v11 = vmul.f32 %v998_v10, %v1889_v22  ;;  %v1650_v13 = vpop.f32.mrb[7].mxu0  ;;  %v1570_v10 = vld [vmem:[%s2022_s7] ss:$0 sm:$0xff] }
 0x523   : > { %v1003_v15 = vsel %vm1891_vm3, -inf, %v1002_v11 }
 0x524   : > { %vm1009_vm10 = vcmp.lt.f32.partialorder %v1003_v15, %v1008_v14 }
 0x525   : > { %vm1010_vm11 = vmand %vm1898_vm5, %vm1009_vm10 }
 0x526   : > { %v1011_v16 = vsel %vm1010_vm11, -10000.0, %v1003_v15 }
 0x527   : > { %v1012_v17 = vsel %vm428_vm2, %v1011_v16, -inf }
 0x528   : > { %1013 = vmax.xlane.f32.xlu0 %v1012_v17 }
 0x53e   : > { %1023 = vrot.lane.b32.xlu0 %v1871_v12, %s1766_s27 }
 0x542   : > { %1173 = vrot.lane.b32.xlu0 %v1871_v12, %s1767_s28 }
 0x5b5   : > { %v1014_v18 = vpop.xlane.xlu0 %1013 }
 0x5b6   : > { %v1015_v19 = vsub.f32 %v1011_v16, %v1014_v18 }
 0x5b8   : > { %v1016_v20 = vmul.f32 1.442695, %v1015_v19 }
 0x5b9   : > { %v1024_v21 = vpop.permute.xlu0 %1023 }
 0x5ba   : > { %1730 = vpow2.f32 %v1016_v20  ;;  %1652 = vmatpush3.msra.mxu1 %v1024_v21 }
 0x5bb   : > { %1661 = vmatprep.subr.mxu1 %v1754_v6 }
 0x5bd   : > { %v1174_v32 = vpop.permute.xlu0 %1173 }
 0x5c4   : > { %v1731_v24 = vpop.eup %1730 }
 0x5c5   : > { %v1018_v25 = vsel %vm428_vm2, %v1731_v24, 0.0 }
 0x5c6   : > { %1019 = vadd.xlane.f32.xlu1 %v1018_v25 }
 0x5d7   : > { %1175 = vrot.lane.b32.xlu1 %v1871_v12, %s1768_s29 }
 0x5db   : > { %1253 = vrot.lane.b32.xlu1 %v1865_v9, %s1769_s11 }
 0x653   : > { %v1020_v26 = vpop.xlane.xlu1 %1019 }
 0x654   : > { %1732 = vrcp.f32 %v1020_v26 }
 0x657   : > { %v1176_v27 = vpop.permute.xlu1 %1175 }
 0x65b   : > { %v1254_v29 = vpop.permute.xlu1 %1253 }
 0x65c   : > { %1690 = vpush %v1254_v29 }
 0x65e   : > { %v1733_v30 = vpop.eup %1732 }
 0x65f   : > { %v1022_v31 = vmul.f32 %v1733_v30, %v1731_v24 }
 0x661   : > { %1654 = vmatmul.mubr.msk.f32.vlgmr.msra.gmra.mrb[8].mxu1 %vm428_vm2, %v1022_v31 }
 0x662   : > { %1662 = vmatpush3.xpose.msk.msra.mxu1 %vm428_vm2, %v1176_v27  ;;  %1663 = vmatprep.mubr.msk.f32.mxu1 %vm1753_vm0, %v1754_v6 }
 0x663   : > { %1671 = vmatprep.subr.mxu1 %v1754_v6 }
 0x665   : > { %1664 = vmatmul.mubr.msk.f32.vlgmr.msra.gmra.mrb[10].mxu1 %vm428_vm2, %v1174_v32 }
 0x666   : > { %1673 = vmatprep.mubr.msk.f32.mxu1 %vm1753_vm0, %v1754_v6  ;;  %1672 = vmatpush3.msra.mxu1 %v417_v28 }
 0x68d   : > { %s1691_s14 = spop %1690 }
 0x68e   : > { %v1257_v39 = vstv %s1691_s14 }
 0x734   : > { %v1095_v34 = vpop.f32.mrb[8].mxu1 }
 0x735   : > { %v1655_v35 = vpop.f32.mrb[9].mxu1  ;;  %1659 = vmatmul.mubr.msk.f32.vlgmr.msra.gmra.mrb[8].mxu0 %vm428_vm2, %v1095_v34 }
 0x736   : > { %1668 = vmatprep.mubr.msk.f32.mxu0 %vm1753_vm0, %v1754_v6 }
 0x738   : > { %v1247_v36 = vpop.f32.mrb[10].mxu1 }
 0x739   : > { %v1251_v37 = vmul.f32 %v1247_v36, %v1889_v22  ;;  %v1665_v38 = vpop.f32.mrb[11].mxu1 }
 0x73b   : > { %v1252_v40 = vsel %vm1891_vm3, -inf, %v1251_v37 }
 0x73c   : > { %vm1258_vm12 = vcmp.lt.f32.partialorder %v1252_v40, %v1257_v39 }
 0x73d   : > { %vm1259_vm13 = vmand %vm1898_vm5, %vm1258_vm12 }
 0x73e   : > { %v1260_v41 = vsel %vm1259_vm13, -10000.0, %v1252_v40 }
 0x73f   : > { %v1261_v42 = vsel %vm428_vm2, %v1260_v41, -inf }
 0x740   : > { %1262 = vmax.xlane.f32.xlu0 %v1261_v42 }
 0x756   : > { %1272 = vrot.lane.b32.xlu0 %v1871_v12, %s1770_s15 }
 0x7cd   : > { %v1263_v6 = vpop.xlane.xlu0 %1262 }
 0x7ce   : > { %v1264_v43 = vsub.f32 %v1260_v41, %v1263_v6 }
 0x7d0   : > { %v1265_v44 = vmul.f32 1.442695, %v1264_v43 }
 0x7d1   : > { %v1273_v22 = vpop.permute.xlu0 %1272 }
 0x7d2   : > { %1734 = vpow2.f32 %v1265_v44  ;;  %1667 = vmatpush3.msra.mxu0 %v1273_v22 }
 0x7dc   : > { %v1735_v45 = vpop.eup %1734 }
 0x7dd   : > { %v1267_v23 = vsel %vm428_vm2, %v1735_v45, 0.0 }
 0x7de   : > { %1268 = vadd.xlane.f32.xlu1 %v1267_v23 }
 0x808   : > { %v1168_v46 = vpop.f32.mrb[8].mxu0 }
 0x809   : > { %v1172_v47 = vadd.f32 %v1168_v46, %v1947_v5  ;;  %v1660_v48 = vpop.f32.mrb[9].mxu0  ;;  %v1569_v5 = vld [vmem:[%s2021_s6] ss:$0 sm:$0xff] }
 0x86b   : > { %v1269_v12 = vpop.xlane.xlu1 %1268 }
 0x86c   : > { %1736 = vrcp.f32 %v1269_v12 }
 0x876   : > { %v1737_v49 = vpop.eup %1736 }
 0x877   : > { %v1271_v50 = vmul.f32 %v1737_v49, %v1735_v45 }
 0x879   : > { %1669 = vmatmul.mubr.msk.f32.vlgmr.msra.gmra.mrb[10].mxu0 %vm428_vm2, %v1271_v50 }
 0x94c   : > { %v1344_v51 = vpop.f32.mrb[10].mxu0 }
 0x94d   : > { %v1670_v52 = vpop.f32.mrb[11].mxu0  ;;  %1674 = vmatmul.mubr.msk.f32.vlgmr.msra.gmra.mrb[12].mxu1 %vm428_vm2, %v1344_v51 }
 0xa20   : > { %v1417_v53 = vpop.f32.mrb[12].mxu1 }
 0xa21   : > { %v1421_v55 = vadd.f32 %v1417_v53, %v1172_v47  ;;  %v1675_v56 = vpop.f32.mrb[13].mxu1 }
 0xa23   : > { %v1429_v57 = vadd.f32 %v1568_v54, %v1421_v55 }
 0xa25   : > { %v1437_v58 = vsel %vm340_vm1, %v1429_v57, 0.0 }
 0xa26   : > { %1438 = vadd.xlane.f32.xlu1 %v1437_v58 }
 0xab3   : > { %v1439_v59 = vpop.xlane.xlu1 %1438 }
 0xab4   : > { %v1441_v60 = vmul.f32 0.03125, %v1439_v59 }
 0xab6   : > { %v1442_v61 = vsub.f32 %v1429_v57, %v1441_v60 }
 0xab8   : > { %v1443_v62 = vmul.f32 %v1442_v61, %v1442_v61 }
 0xaba   : > { %v1444_v63 = vsel %vm340_vm1, %v1443_v62, 0.0 }
 0xabb   : > { %1445 = vadd.xlane.f32.xlu1 %v1444_v63 }
 0xacc   : > { %1433 = vrot.lane.b32.xlu1 %v1865_v9, %s1771_s21  ;;  %v1571_v9 = vld [vmem:[%s2023_s8] ss:$0 sm:$0xff] }
 0xb48   : > { %v1446_v0 = vpop.xlane.xlu1 %1445 }
 0xb49   : > { %v1447_v1 = vmul.f32 0.03125, %v1446_v0 }
 0xb4b   : > { %v1448_v2 = vadd.f32 1e-05, %v1447_v1 }
 0xb4c   : > { %v1434_v3 = vpop.permute.xlu1 %1433 }
 0xb4d   : > { %1738 = vrsqrt.f32 %v1448_v2  ;;  %1692 = vpush %v1434_v3 }
 0xb57   : > { %v1739_v4 = vpop.eup %1738 }
 0xb58   : > { %v1450_v7 = vmul.f32 %v1739_v4, %v1442_v61 }
 0xb5a   : > { %v1457_v11 = vmul.f32 %v1569_v5, %v1450_v7 }
 0xb5c   : > { %v1464_v13 = vadd.f32 %v1570_v10, %v1457_v11 }
 0xb5e   : > { %v1465_v14 = vand.u32 2147483647, %v1464_v13 }
 0xb60   : > { %v1472_v15 = vsub.f32 %v1465_v14, %v1571_v9 }
 0xb62   : > { %v1572_v16 = vmul.f32 -1.442695, %v1472_v15 }
 0xb64   : > { %1740 = vpow2.f32 %v1572_v16 }
 0xb6e   : > { %v1741_v17 = vpop.eup %1740 }
 0xb6f   : > { %v1476_v18 = vadd.f32 1.0, %v1741_v17 }
 0xb71   : > { %1742 = vrcp.f32 %v1476_v18 }
 0xb7b   : > { %v1743_v19 = vpop.eup %1742 }
 0xb7c   : > { %v1479_v21 = vmul.f32 %v1743_v19, %v1429_v57 }
 0xb7e   : > { %s1693_s28 = spop %1692 }
 0xb7f   : > { %v1480_v20 = vstv %s1693_s28  ;;  %s1482_s29 = ssub.f32 1.0, %s1693_s28 }
 0xb80   : > { %v1481_v25 = vmul.f32 %v1480_v20, %v1479_v21 }
 0xb81   : > { %v1483_v24 = vstv %s1482_s29 }
 0xb82   : > { %v1484_v26 = vmul.f32 %v1483_v24, %v1429_v57 }
 0xb84   : > { %v1485_v27 = vadd.f32 %v1484_v26, %v1481_v25 }
 0xb86   : > { %v1573_v29 = vclamps-f32 %v1485_v27, 100.0 }
 0xb88   : > { %v1488_v30 = vadd.f32 %v1573_v29, %v1855_v8 }
 0xb8a   : > { %1489 = vst.msk [vmem:[%s327_s13] sm:$0xff] %vm340_vm1, %v1488_v30 }
 0xb8b PF: > { %s19_s30 = sadd.s32 1, %s1750_s30  }
 0xb8c   : > { %p16_p4 = scmp.ge.s32.totalorder %s19_s30, 4  }
 0xb8e   :  { %18 = sbr.rel (!%p16_p4) target bundleno = 1 (0x1), region = 86 }

</bundles_post_ra>
